<compile_context>
chip_gen: v7x
topology: tpu7x:2x2x1
jax: 0.10.0
libtpu: 0.0.40
codegen_flags: <defaults>
</compile_context>

<pallas_src>
import functools
import numpy as np
import jax
import jax.numpy as jnp
from jax.experimental import pallas as pl
from jax.experimental.pallas import tpu as pltpu


_EPS = 1e-12                      # like F.normalize(eps=1e-12)
_SMEM_SPEC = pl.BlockSpec(memory_space=pltpu.MemorySpace.SMEM)
_VMEM_LIMIT = 48 * 1024 * 1024    # <= 75% of v7x's 64 MiB physical VMEM


def _round_up(x, m):
    return ((x + m - 1) // m) * m


def _pick_k_tile(k_pad):
    """Largest K tile dividing k_pad (k_pad is already a multiple of 128)."""
    for c in (2048, 1024, 512, 256, 128):
        if k_pad % c == 0:
            return c
    return 128


def _pick_row_tile(rows):
    """rows is a multiple of 8.  Split into >=2 blocks once rows >= 16 (feeds
    both v7x TensorCores, enables block pipelining), cap a block at 256 rows."""
    if rows < 16:
        return rows
    for c in (256, 128, 64, 32, 16, 8):
        if c <= rows // 2 and rows % c == 0:
            return c
    return rows


# in-kernel helpers -----------------------------------------------------------
def _rownorm(x):
    """x / ||x||_2 along the last axis, eps-protected, rsqrt (EUP) not sqrt+div.
    Note: clamps sum-of-squares at 1e-12 (F.normalize clamps the norm)."""
    return x * jax.lax.rsqrt(jnp.maximum(jnp.sum(x * x, axis=-1, keepdims=True), _EPS))


def _bf16(x):
    return x if x.dtype == jnp.bfloat16 else x.astype(jnp.bfloat16)


def _mm(a, b):
    """A @ B, bf16 operands (no cast if already bf16), f32 MXU accumulation."""
    return jnp.dot(_bf16(a), _bf16(b), preferred_element_type=jnp.float32)


def _rowdot(a, b):
    """A @ B.T via dot_general contracting last dims (no in-kernel transpose)."""
    return jax.lax.dot_general(_bf16(a), _bf16(b), (((1,), (1,)), ((), ())),
                               preferred_element_type=jnp.float32)


# ----------------------------------------------------------------------------
# kernel 1: fused image path
#   raw        = x_flat @ w_img                 (frozen encoder stand-in, K-tiled)
#   fixed      = normalize(raw)
#   combined   = normalize(normalize(raw + vis_shift) + fixed)
#   (vis_shift = mean(ctx_visual) @ w_vp is batch independent, precomputed)
# ----------------------------------------------------------------------------
def _image_path_kernel(x_ref, wimg_ref, vshift_ref, fixed_ref, comb_ref, acc_ref):
    k = pl.program_id(1)

    @pl.when(k == 0)
    def _():
        acc_ref[...] = jnp.zeros_like(acc_ref)

    acc_ref[...] += _mm(x_ref[...], wimg_ref[...])

    @pl.when(k == pl.num_programs(1) - 1)
    def _():
        raw = acc_ref[...]
        fixed_n = _rownorm(raw)
        # TODO(synk): real prompted ViT (per-layer PromptAttention injection) is
        # an external frozen module; modelled as an additive projected shift.
        prompted_n = _rownorm(raw + vshift_ref[...])
        fixed_ref[...] = fixed_n.astype(fixed_ref.dtype)
        comb_ref[...] = _rownorm(prompted_n + fixed_n).astype(comb_ref.dtype)


def image_path(x_flat_bf16, w_img_bf16, vis_shift_f32):
    b_pad, k_pad = x_flat_bf16.shape
    d = w_img_bf16.shape[1]
    tk = _pick_k_tile(k_pad)
    nk = k_pad // tk
    tb = _pick_row_tile(b_pad)
    nb = b_pad // tb
    return pl.pallas_call(
        _image_path_kernel,
        grid=(nb, nk),                                   # (row-blocks, K-blocks)
        in_specs=[
            pl.BlockSpec((tb, tk), lambda i, k: (i, k)),
            pl.BlockSpec((tk, d), lambda i, k: (k, 0)),
            pl.BlockSpec((1, d), lambda i, k: (0, 0)),
        ],
        out_specs=(
            pl.BlockSpec((tb, d), lambda i, k: (i, 0)),
            pl.BlockSpec((tb, d), lambda i, k: (i, 0)),
        ),
        out_shape=(jax.ShapeDtypeStruct((b_pad, d), jnp.bfloat16),
                   jax.ShapeDtypeStruct((b_pad, d), jnp.bfloat16)),
        scratch_shapes=[pltpu.VMEM((tb, d), jnp.float32)],
        compiler_params=pltpu.CompilerParams(
            dimension_semantics=("parallel", "arbitrary"),
            vmem_limit_bytes=_VMEM_LIMIT),
    )(x_flat_bf16, w_img_bf16, vis_shift_f32)


# ----------------------------------------------------------------------------
# kernel 2: fused text path (on EOT rows, padded only to a multiple of 8 / tile)
#   h   = x + x @ w_text            (transformer stand-in: residual linear)
#   hn  = LayerNorm(h) (fp32)       then  t = hn @ text_projection
#   out = normalize(normalize(t) + ori_embedding_normalised)
# ----------------------------------------------------------------------------
def _text_path_kernel(x_ref, wt_ref, g_ref, b_ref, proj_ref, ori_ref, out_ref):
    x = x_ref[...]
    # TODO(synk): real clip_model.transformer resblocks (with prompt_projections
    # / layer schedule) are external frozen modules; stand-in = one residual linear.
    h = x + _mm(x, wt_ref[...])
    mu = jnp.mean(h, axis=-1, keepdims=True)
    var = jnp.mean(jnp.square(h - mu), axis=-1, keepdims=True)
    hn = (h - mu) * jax.lax.rsqrt(var + 1e-5)
    hn = hn * g_ref[...] + b_ref[...]
    t_raw = _mm(hn, proj_ref[...])
    out_ref[...] = _rownorm(_rownorm(t_raw) + ori_ref[...]).astype(out_ref.dtype)


def text_path(x_eot_pad, w_text_bf16, ln_g, ln_b, text_proj_bf16, ori_pad):
    npad_t, d = x_eot_pad.shape
    tm = npad_t if npad_t <= 256 else 256       # full block on small n_cls, 256 tiles otherwise
    return pl.pallas_call(
        _text_path_kernel,
        grid=(npad_t // tm,),
        in_specs=[
            pl.BlockSpec((tm, d), lambda i: (i, 0)),
            pl.BlockSpec((d, d), lambda i: (0, 0)),
            pl.BlockSpec((1, d), lambda i: (0, 0)),
            pl.BlockSpec((1, d), lambda i: (0, 0)),
            pl.BlockSpec((d, d), lambda i: (0, 0)),
            pl.BlockSpec((tm, d), lambda i: (i, 0)),
        ],
        out_specs=pl.BlockSpec((tm, d), lambda i: (i, 0)),
        out_shape=jax.ShapeDtypeStruct((npad_t, d), jnp.bfloat16),
        compiler_params=pltpu.CompilerParams(
            dimension_semantics=("parallel",),
            vmem_limit_bytes=_VMEM_LIMIT),
    )(x_eot_pad, w_text_bf16, ln_g.reshape(1, d), ln_b.reshape(1, d),
      text_proj_bf16, ori_pad)


# ----------------------------------------------------------------------------
# kernel 3: fused logits + training loss, gridded over batch-row blocks
#   logits       = scale * img_comb  @ text.T      (lane-dense, written to HBM)
#   logits_fixed = 10 * img_fixed @ normalize(vpt_fc_w).T   (VMEM-resident)
#   logits_      = 10 * img_comb  @ normalize(vpt_fc_w).T   (VMEM-resident)
#   loss = CE(logits) + w*(1-cos(text,text_old)) + w_v*(1-cos(img_fixed,img_comb))
#          + 0.5*(CE(logits_) + CE(logits_fixed))
#   Each block writes a partial loss; wrapper sums the (nblk*8,128) partials.
# ----------------------------------------------------------------------------
def _logits_loss_kernel(n_cls, b_actual, imgc_ref, imgf_ref, txt_ref, txtold_ref,
                        vpt_ref, label_ref, scal_ref, logits_ref, loss_ref):
    i = pl.program_id(0)
    tb = imgc_ref.shape[0]
    npad = txt_ref.shape[0]
    scale = scal_ref[0]
    w_txt = scal_ref[1]
    w_vis = scal_ref[2]
    inv_b = 1.0 / b_actual

    # masks: valid batch rows of this block, valid (non-padded) classes, one-hot
    rows = jax.lax.broadcasted_iota(jnp.int32, (tb, 1), 0) + i * tb
    row_valid = (rows < b_actual).astype(jnp.float32)
    cols = jax.lax.broadcasted_iota(jnp.int32, (tb, npad), 1)
    onehot = cols == label_ref[...]
    pad_mask = jnp.where(cols < n_cls, 0.0, -1e30)

    def ce(lg):                                   # mean-reduction CE over valid rows
        lg = lg + pad_mask
        m = jnp.max(lg, axis=-1, keepdims=True)
        lse = m + jnp.log(jnp.sum(jnp.exp(lg - m), axis=-1, keepdims=True))
        tgt = jnp.sum(jnp.where(onehot, lg, 0.0), axis=-1, keepdims=True)
        return jnp.sum((lse - tgt) * row_valid) * inv_b

    def cos_rows(a, bb):                          # per-row cosine sim, eps=1e-7
        na = jnp.sqrt(jnp.sum(a * a, axis=-1, keepdims=True))
        nb = jnp.sqrt(jnp.sum(bb * bb, axis=-1, keepdims=True))
        return jnp.sum(a * bb, axis=-1, keepdims=True) / jnp.maximum(na * nb, 1e-7)

    imgc = imgc_ref[...]                          # bf16 (already MXU-ready)
    imgf = imgf_ref[...]                          # bf16

    # (1) main logits -> HBM, consumed by its CE immediately (one f32 mat live)
    logits = scale * _rowdot(imgc, txt_ref[...])
    logits_ref[...] = logits
    loss = ce(logits)

    # (2)/(3) VPT logits, VMEM-resident only; bf16 cast of vptn hoisted once
    vptn = _rownorm(vpt_ref[...]).astype(jnp.bfloat16)
    loss += 0.5 * ce(10.0 * _rowdot(imgf, vptn))
    loss += 0.5 * ce(10.0 * _rowdot(imgc, vptn))

    # visual cosine-distance term (per valid batch row)
    vis_cos = cos_rows(imgf.astype(jnp.float32), imgc.astype(jnp.float32))
    loss += w_vis * jnp.sum((1.0 - vis_cos) * row_valid) * inv_b

    # text cosine-distance term is batch independent: only block 0 contributes
    first = (i == 0).astype(jnp.float32)
    cls_valid = (jax.lax.broadcasted_iota(jnp.int32, (npad, 1), 0)
                 < n_cls).astype(jnp.float32)
    txt_cos = cos_rows(txt_ref[...].astype(jnp.float32), txtold_ref[...])
    loss += first * w_txt * jnp.sum((1.0 - txt_cos) * cls_valid) / n_cls

    # scatter this block's partial loss into [0,0] of its (8,128) output tile
    r8 = jax.lax.broadcasted_iota(jnp.int32, (8, 128), 0)
    c8 = jax.lax.broadcasted_iota(jnp.int32, (8, 128), 1)
    loss_ref[...] = jnp.where((r8 == 0) & (c8 == 0), loss, 0.0)


def logits_and_loss(imgc, imgf, txt_pad, txtold_pad, vpt_pad, label2d, scalars,
                    n_cls, b_actual):
    b_pad, d = imgc.shape
    npad = txt_pad.shape[0]
    tb = _pick_row_tile(b_pad)
    nblk = b_pad // tb
    kernel = functools.partial(_logits_loss_kernel, n_cls, b_actual)
    logits_pad, loss_parts = pl.pallas_call(
        kernel,
        grid=(nblk,),
        in_specs=[
            pl.BlockSpec((tb, d), lambda i: (i, 0)),
            pl.BlockSpec((tb, d), lambda i: (i, 0)),
            pl.BlockSpec((npad, d), lambda i: (0, 0)),
            pl.BlockSpec((npad, d), lambda i: (0, 0)),
            pl.BlockSpec((npad, d), lambda i: (0, 0)),
            pl.BlockSpec((tb, 1), lambda i: (i, 0)),
            _SMEM_SPEC,
        ],
        out_specs=(
            pl.BlockSpec((tb, npad), lambda i: (i, 0)),
            pl.BlockSpec((8, 128), lambda i: (i, 0)),
        ),
        out_shape=(jax.ShapeDtypeStruct((b_pad, npad), jnp.float32),
                   jax.ShapeDtypeStruct((nblk * 8, 128), jnp.float32)),
        compiler_params=pltpu.CompilerParams(
            dimension_semantics=("parallel",),
            vmem_limit_bytes=_VMEM_LIMIT),
    )(imgc, imgf, txt_pad, txtold_pad, vpt_pad, label2d, scalars)
    return logits_pad, jnp.sum(loss_parts)


# eval-only logits (no loss) --------------------------------------------------
def _eval_logits_kernel(imgc_ref, txt_ref, scal_ref, out_ref):
    out_ref[...] = scal_ref[0] * _rowdot(imgc_ref[...], txt_ref[...])


def eval_logits(imgc, txt_pad, scalars):
    b_pad, d = imgc.shape
    npad = txt_pad.shape[0]
    return pl.pallas_call(
        _eval_logits_kernel,
        grid=(1,),
        in_specs=[pl.BlockSpec((b_pad, d), lambda i: (0, 0)),
                  pl.BlockSpec((npad, d), lambda i: (0, 0)),
                  _SMEM_SPEC],
        out_specs=pl.BlockSpec((b_pad, npad), lambda i: (0, 0)),
        out_shape=jax.ShapeDtypeStruct((b_pad, npad), jnp.float32),
        compiler_params=pltpu.CompilerParams(vmem_limit_bytes=_VMEM_LIMIT),
    )(imgc, txt_pad, scalars)


# ----------------------------------------------------------------------------
# parameter construction (deterministic, synthetic; no checkpoint loading)
# ----------------------------------------------------------------------------
def init_params(key, *, n_cls, n_ctx, n_ctx_v, seq, d, d_vis, img_flat):
    ks = jax.random.split(key, 12)
    suffix_len = seq - 1 - n_ctx
    ori = jax.random.normal(ks[4], (n_cls, d), jnp.float32)
    # ori_embedding is stored L2-normalised in PromptLearner.__init__ (init-time).
    ori = ori / jnp.linalg.norm(ori, axis=-1, keepdims=True)
    params = {
        # PromptLearner parameters / buffers (trainable -> f32)
        "ctx": 0.02 * jax.random.normal(ks[0], (n_ctx, d), jnp.float32),
        "ctx_visual": 0.02 * jax.random.normal(ks[1], (n_ctx_v, d_vis), jnp.float32),
        "token_prefix": 0.02 * jax.random.normal(ks[2], (n_cls, 1, d), jnp.float32),
        "token_suffix": 0.02 * jax.random.normal(ks[3], (n_cls, suffix_len, d), jnp.float32),
        "ori_embedding": ori,
        "vpt_fc_w": 0.05 * jax.random.normal(ks[5], (n_cls, d), jnp.float32),
        # TextEncoder parameters
        "pos_emb": 0.01 * jax.random.normal(ks[6], (seq, d), jnp.float32),
        "ln_g": jnp.ones((d,), jnp.float32),
        "ln_b": jnp.zeros((d,), jnp.float32),
        # frozen stand-in weights stored bf16 in HBM (half the DMA bytes)
        "text_proj": (0.05 * jax.random.normal(ks[7], (d, d), jnp.float32)).astype(jnp.bfloat16),
        "w_text": (0.05 * jax.random.normal(ks[8], (d, d), jnp.float32)).astype(jnp.bfloat16),
        "w_img": (0.05 * jax.random.normal(ks[9], (img_flat, d), jnp.float32)).astype(jnp.bfloat16),
        "w_vp": (0.05 * jax.random.normal(ks[10], (d_vis, d), jnp.float32)).astype(jnp.bfloat16),
        "logit_scale": jnp.asarray(np.log(1.0 / 0.07), jnp.float32),
    }
    # tokenized prompts: EOT token (largest id) at a per-class position
    tok = np.ones((n_cls, seq), np.int32)
    for i in range(n_cls):
        tok[i, 1 + n_ctx + (i % suffix_len)] = 49407
    params["tokenized_prompts"] = jnp.asarray(tok)
    return params


# ----------------------------------------------------------------------------
# CustomCLIP forward
# ----------------------------------------------------------------------------
def custom_clip_forward(params, image, label=None, *, weight=2.0, weight_visual=1.0,
                        training=True, feat_flag=False):
    b = image.shape[0]
    n_cls, d = params["vpt_fc_w"].shape
    n_ctx = params["ctx"].shape[0]

    # ---- frozen + prompted image encoders (synthetic stand-ins), fused ----
    b_pad = _round_up(b, 8)                              # tile-aligned batch rows
    x_flat = image.reshape(b, -1).astype(jnp.float32)
    kdim = x_flat.shape[1]
    k_pad = _round_up(kdim, 128)                         # never use a full-K block
    x_flat = jnp.pad(x_flat, ((0, b_pad - b), (0, k_pad - kdim))).astype(jnp.bfloat16)
    w_img = params["w_img"]
    if k_pad != kdim:
        w_img = jnp.pad(w_img, ((0, k_pad - kdim), (0, 0)))
    # visual-prompt shift is batch independent -> precompute outside kernel 1
    vis_shift = jnp.dot(jnp.mean(params["ctx_visual"], axis=0, keepdims=True
                                 ).astype(jnp.bfloat16),
                        params["w_vp"], preferred_element_type=jnp.float32)  # (1, d)
    image_features_fixed, image_features = image_path(x_flat, w_img, vis_shift)
    if feat_flag:
        return image_features_fixed[:b]

    # ---- PromptLearner.forward: prompt = cat([prefix, ctx, suffix], dim=1) ----
    ctx = jnp.broadcast_to(params["ctx"][None], (n_cls, n_ctx, d))
    prompts = jnp.concatenate(
        [params["token_prefix"], ctx, params["token_suffix"]], axis=1)
    x = prompts + params["pos_emb"][None]                      # (n_cls, seq, d)
    eot = jnp.argmax(params["tokenized_prompts"], axis=-1)     # (n_cls,)
    # The linear+residual transformer stand-in commutes with the EOT gather,
    # so gather first (seq× fewer FLOPs).  Not valid for a real transformer.
    x_eot = x[jnp.arange(n_cls), eot]                          # (n_cls, d)

    # text path runs on n_cls padded only to its own tile (no 128-class waste)
    npad_t = _round_up(n_cls, 8) if n_cls <= 256 else _round_up(n_cls, 256)
    x_eot_pad = jnp.pad(x_eot, ((0, npad_t - n_cls), (0, 0)))
    ori = params["ori_embedding"]                              # already L2-normalised
    ori_pad_t = jnp.pad(ori, ((0, npad_t - n_cls), (0, 0)))
    text_features_t = text_path(x_eot_pad, params["w_text"], params["ln_g"],
                                params["ln_b"], params["text_proj"], ori_pad_t)

    # class axis padded to a multiple of 128 only for the lane-dense logits
    npad_l = _round_up(n_cls, 128)
    txt_pad = jnp.pad(text_features_t[:n_cls], ((0, npad_l - n_cls), (0, 0)))

    scalars = jnp.stack([jnp.exp(params["logit_scale"]),
                         jnp.asarray(weight, jnp.float32),
                         jnp.asarray(weight_visual, jnp.float32)]).astype(jnp.float32)

    if not training:
        logits_pad = eval_logits(image_features, txt_pad, scalars)
        return logits_pad[:b, :n_cls]

    # ---- training: fused logits + loss (VPT logits stay VMEM-resident) ----
    txtold_pad = jnp.pad(ori, ((0, npad_l - n_cls), (0, 0)))
    vpt_pad = jnp.pad(params["vpt_fc_w"], ((0, npad_l - n_cls), (0, 0)))
    label2d = jnp.pad(jnp.asarray(label, jnp.int32).reshape(-1),
                      (0, b_pad - b)).reshape(b_pad, 1)
    logits_pad, loss = logits_and_loss(image_features, image_features_fixed,
                                       txt_pad, txtold_pad, vpt_pad, label2d,
                                       scalars, n_cls, b)
    return logits_pad[:b, :n_cls], loss


# ----------------------------------------------------------------------------
if __name__ == "__main__":
    # small shapes consistent with the module's forward
    B, C, H, W = 2, 3, 16, 16
    N_CLS, N_CTX, N_CTX_V = 8, 4, 4
    SEQ, D, D_VIS = 8, 128, 256

    key = jax.random.PRNGKey(0)
    k_img, k_lab, k_par = jax.random.split(key, 3)

    image = jax.random.normal(k_img, (B, C, H, W), jnp.float32)      # NCHW
    label = jax.random.randint(k_lab, (B,), 0, N_CLS)
    params = init_params(k_par, n_cls=N_CLS, n_ctx=N_CTX, n_ctx_v=N_CTX_V,
                         seq=SEQ, d=D, d_vis=D_VIS, img_flat=C * H * W)

    fwd = jax.jit(functools.partial(custom_clip_forward, training=True))
    logits, loss = fwd(params, image, label)
    jax.block_until_ready((logits, loss))
    assert logits.shape == (B, N_CLS)
    assert np.all(np.isfinite(np.asarray(logits, dtype=np.float32)))
    assert np.isfinite(np.asarray(loss, dtype=np.float32))

    fwd_eval = jax.jit(functools.partial(custom_clip_forward, training=False))
    logits_eval = fwd_eval(params, image)
    jax.block_until_ready(logits_eval)
    assert logits_eval.shape == (B, N_CLS)
    assert np.all(np.isfinite(np.asarray(logits_eval, dtype=np.float32)))

    print("KERNEL_OK")
</pallas_src>

<mosaic_0001>
module attributes {stable_mosaic.version = 11 : i64} {
  func.func @_text_path_kernel(%arg0: i32, %arg1: memref<8x128xf32, #tpu.memory_space<vmem>>, %arg2: memref<128x128xbf16, #tpu.memory_space<vmem>>, %arg3: memref<1x128xf32, #tpu.memory_space<vmem>>, %arg4: memref<1x128xf32, #tpu.memory_space<vmem>>, %arg5: memref<128x128xbf16, #tpu.memory_space<vmem>>, %arg6: memref<8x128xf32, #tpu.memory_space<vmem>>, %arg7: memref<8x128xbf16, #tpu.memory_space<vmem>>) attributes {dimension_semantics = [#tpu.dimension_semantics<parallel>], iteration_bounds = array<i64: 1>, scalar_prefetch = 0 : i64, scratch_operands = 0 : i64, tpu.core_type = #tpu.core_type<tc>, window_params = [{transform_indices = @transform_0, window_bounds = array<i64: 8, 128>}, {pipeline_mode = #tpu.pipeline_mode<synchronous>, transform_indices = @transform_1, window_bounds = array<i64: 128, 128>}, {pipeline_mode = #tpu.pipeline_mode<synchronous>, transform_indices = @transform_2, window_bounds = array<i64: 1, 128>}, {pipeline_mode = #tpu.pipeline_mode<synchronous>, transform_indices = @transform_3, window_bounds = array<i64: 1, 128>}, {pipeline_mode = #tpu.pipeline_mode<synchronous>, transform_indices = @transform_4, window_bounds = array<i64: 128, 128>}, {transform_indices = @transform_5, window_bounds = array<i64: 8, 128>}, {transform_indices = @transform_6, window_bounds = array<i64: 8, 128>}]} {
    %c0 = arith.constant 0 : index
    %c0_0 = arith.constant 0 : index
    %0 = vector.load %arg1[%c0, %c0_0] : memref<8x128xf32, #tpu.memory_space<vmem>>, vector<8x128xf32>
    %c0_1 = arith.constant 0 : index
    %c0_2 = arith.constant 0 : index
    %1 = vector.load %arg2[%c0_1, %c0_2] : memref<128x128xbf16, #tpu.memory_space<vmem>>, vector<128x128xbf16>
    %2 = arith.truncf %0 : vector<8x128xf32> to vector<8x128xbf16>
    %cst = arith.constant dense<0.000000e+00> : vector<8x128xf32>
    %3 = tpu.matmul %2, %1, %cst {dimension_numbers = #tpu.dot_dimension_numbers<[1], [0], [0], [1], [0, 0, 1, 1], [], []>} : vector<8x128xbf16>, vector<128x128xbf16>, vector<8x128xf32> -> vector<8x128xf32>
    %4 = arith.addf %0, %3 : vector<8x128xf32>
    %cst_3 = arith.constant dense<0.000000e+00> : vector<8xf32>
    %5 = vector.multi_reduction <add>, %4, %cst_3 [1] : vector<8x128xf32> to vector<8xf32>
    %6 = vector.shape_cast %5 : vector<8xf32> to vector<8x1xf32>
    %cst_4 = arith.constant 1.280000e+02 : f32
    %7 = vector.broadcast %cst_4 : f32 to vector<8x1xf32>
    %8 = arith.divf %6, %7 : vector<8x1xf32>
    %9 = vector.broadcast %8 : vector<8x1xf32> to vector<8x128xf32>
    %10 = arith.subf %4, %9 : vector<8x128xf32>
    %11 = arith.mulf %10, %10 : vector<8x128xf32>
    %cst_5 = arith.constant dense<0.000000e+00> : vector<8xf32>
    %12 = vector.multi_reduction <add>, %11, %cst_5 [1] : vector<8x128xf32> to vector<8xf32>
    %13 = vector.shape_cast %12 : vector<8xf32> to vector<8x1xf32>
    %cst_6 = arith.constant 1.280000e+02 : f32
    %14 = vector.broadcast %cst_6 : f32 to vector<8x1xf32>
    %15 = arith.divf %13, %14 : vector<8x1xf32>
    %16 = vector.broadcast %8 : vector<8x1xf32> to vector<8x128xf32>
    %17 = arith.subf %4, %16 : vector<8x128xf32>
    %cst_7 = arith.constant 9.99999974E-6 : f32
    %18 = vector.broadcast %cst_7 : f32 to vector<8x1xf32>
    %19 = arith.addf %15, %18 : vector<8x1xf32>
    %20 = math.rsqrt %19 : vector<8x1xf32>
    %21 = vector.broadcast %20 : vector<8x1xf32> to vector<8x128xf32>
    %22 = arith.mulf %17, %21 : vector<8x128xf32>
    %c0_8 = arith.constant 0 : index
    %c0_9 = arith.constant 0 : index
    %23 = vector.load %arg3[%c0_8, %c0_9] : memref<1x128xf32, #tpu.memory_space<vmem>>, vector<1x128xf32>
    %24 = vector.broadcast %23 : vector<1x128xf32> to vector<8x128xf32>
    %25 = arith.mulf %22, %24 : vector<8x128xf32>
    %c0_10 = arith.constant 0 : index
    %c0_11 = arith.constant 0 : index
    %26 = vector.load %arg4[%c0_10, %c0_11] : memref<1x128xf32, #tpu.memory_space<vmem>>, vector<1x128xf32>
    %27 = vector.broadcast %26 : vector<1x128xf32> to vector<8x128xf32>
    %28 = arith.addf %25, %27 : vector<8x128xf32>
    %c0_12 = arith.constant 0 : index
    %c0_13 = arith.constant 0 : index
    %29 = vector.load %arg5[%c0_12, %c0_13] : memref<128x128xbf16, #tpu.memory_space<vmem>>, vector<128x128xbf16>
    %30 = arith.truncf %28 : vector<8x128xf32> to vector<8x128xbf16>
    %cst_14 = arith.constant dense<0.000000e+00> : vector<8x128xf32>
    %31 = tpu.matmul %30, %29, %cst_14 {dimension_numbers = #tpu.dot_dimension_numbers<[1], [0], [0], [1], [0, 0, 1, 1], [], []>} : vector<8x128xbf16>, vector<128x128xbf16>, vector<8x128xf32> -> vector<8x128xf32>
    %32 = arith.mulf %31, %31 : vector<8x128xf32>
    %cst_15 = arith.constant dense<0.000000e+00> : vector<8xf32>
    %33 = vector.multi_reduction <add>, %32, %cst_15 [1] : vector<8x128xf32> to vector<8xf32>
    %34 = vector.shape_cast %33 : vector<8xf32> to vector<8x1xf32>
    %cst_16 = arith.constant 9.99999996E-13 : f32
    %35 = vector.broadcast %cst_16 : f32 to vector<8x1xf32>
    %36 = arith.maximumf %34, %35 : vector<8x1xf32>
    %37 = math.rsqrt %36 : vector<8x1xf32>
    %38 = vector.broadcast %37 : vector<8x1xf32> to vector<8x128xf32>
    %39 = arith.mulf %31, %38 : vector<8x128xf32>
    %c0_17 = arith.constant 0 : index
    %c0_18 = arith.constant 0 : index
    %40 = vector.load %arg6[%c0_17, %c0_18] : memref<8x128xf32, #tpu.memory_space<vmem>>, vector<8x128xf32>
    %41 = arith.addf %39, %40 : vector<8x128xf32>
    %42 = arith.mulf %41, %41 : vector<8x128xf32>
    %cst_19 = arith.constant dense<0.000000e+00> : vector<8xf32>
    %43 = vector.multi_reduction <add>, %42, %cst_19 [1] : vector<8x128xf32> to vector<8xf32>
    %44 = vector.shape_cast %43 : vector<8xf32> to vector<8x1xf32>
    %cst_20 = arith.constant 9.99999996E-13 : f32
    %45 = vector.broadcast %cst_20 : f32 to vector<8x1xf32>
    %46 = arith.maximumf %44, %45 : vector<8x1xf32>
    %47 = math.rsqrt %46 : vector<8x1xf32>
    %48 = vector.broadcast %47 : vector<8x1xf32> to vector<8x128xf32>
    %49 = arith.mulf %41, %48 : vector<8x128xf32>
    %50 = arith.truncf %49 : vector<8x128xf32> to vector<8x128xbf16>
    %c0_21 = arith.constant 0 : index
    %c0_22 = arith.constant 0 : index
    %51 = vector.load %arg7[%c0_21, %c0_22] : memref<8x128xbf16, #tpu.memory_space<vmem>>, vector<8x128xbf16>
    tpu.vector_store %arg7[%c0_21, %c0_22], %50 {strides = array<i32>} : memref<8x128xbf16, #tpu.memory_space<vmem>>, vector<8x128xbf16>,
    return
  }
  func.func @transform_0(%arg0: i32) -> (i32, i32) {
    %c0_i32 = arith.constant 0 : i32
    %c0_i32_0 = arith.constant 0 : i32
    return %arg0, %c0_i32 : i32, i32
  }
  func.func @transform_1(%arg0: i32) -> (i32, i32) {
    %c0_i32 = arith.constant 0 : i32
    %c0_i32_0 = arith.constant 0 : i32
    %c0_i32_1 = arith.constant 0 : i32
    return %c0_i32, %c0_i32_0 : i32, i32
  }
  func.func @transform_2(%arg0: i32) -> (i32, i32) {
    %c0_i32 = arith.constant 0 : i32
    %c0_i32_0 = arith.constant 0 : i32
    %c0_i32_1 = arith.constant 0 : i32
    return %c0_i32, %c0_i32_0 : i32, i32
  }
  func.func @transform_3(%arg0: i32) -> (i32, i32) {
    %c0_i32 = arith.constant 0 : i32
    %c0_i32_0 = arith.constant 0 : i32
    %c0_i32_1 = arith.constant 0 : i32
    return %c0_i32, %c0_i32_0 : i32, i32
  }
  func.func @transform_4(%arg0: i32) -> (i32, i32) {
    %c0_i32 = arith.constant 0 : i32
    %c0_i32_0 = arith.constant 0 : i32
    %c0_i32_1 = arith.constant 0 : i32
    return %c0_i32, %c0_i32_0 : i32, i32
  }
  func.func @transform_5(%arg0: i32) -> (i32, i32) {
    %c0_i32 = arith.constant 0 : i32
    %c0_i32_0 = arith.constant 0 : i32
    return %arg0, %c0_i32 : i32, i32
  }
  func.func @transform_6(%arg0: i32) -> (i32, i32) {
    %c0_i32 = arith.constant 0 : i32
    %c0_i32_0 = arith.constant 0 : i32
    return %arg0, %c0_i32 : i32, i32
  }
}

module attributes {stable_mosaic.version = 11 : i64} {
  func.func @_image_path_kernel(%arg0: i32, %arg1: i32, %arg2: memref<8x256xbf16, #tpu.memory_space<vmem>>, %arg3: memref<256x128xbf16, #tpu.memory_space<vmem>>, %arg4: memref<1x128xf32, #tpu.memory_space<vmem>>, %arg5: memref<8x128xbf16, #tpu.memory_space<vmem>>, %arg6: memref<8x128xbf16, #tpu.memory_space<vmem>>, %arg7: memref<8x128xf32, #tpu.memory_space<vmem>>) attributes {dimension_semantics = [#tpu.dimension_semantics<parallel>, #tpu.dimension_semantics<arbitrary>], iteration_bounds = array<i64: 1, 3>, scalar_prefetch = 0 : i64, scratch_operands = 1 : i64, tpu.core_type = #tpu.core_type<tc>, window_params = [{transform_indices = @transform_0, window_bounds = array<i64: 8, 256>}, {transform_indices = @transform_1, window_bounds = array<i64: 256, 128>}, {pipeline_mode = #tpu.pipeline_mode<synchronous>, transform_indices = @transform_2, window_bounds = array<i64: 1, 128>}, {transform_indices = @transform_3, window_bounds = array<i64: 8, 128>}, {transform_indices = @transform_4, window_bounds = array<i64: 8, 128>}]} {
    %c0_i32 = arith.constant 0 : i32
    %0 = arith.cmpi eq, %arg1, %c0_i32 : i32
    %1 = arith.extui %0 : i1 to i32
    %c0_i32_0 = arith.constant 0 : i32
    %2 = arith.cmpi ne, %1, %c0_i32_0 : i32
    scf.if %2 {
      %cst_9 = arith.constant 0.000000e+00 : f32
      %12 = vector.broadcast %cst_9 : f32 to vector<8x128xf32>
      %c0_10 = arith.constant 0 : index
      %c0_11 = arith.constant 0 : index
      %13 = vector.load %arg7[%c0_10, %c0_11] : memref<8x128xf32, #tpu.memory_space<vmem>>, vector<8x128xf32>
      tpu.vector_store %arg7[%c0_10, %c0_11], %12 {strides = array<i32>} : memref<8x128xf32, #tpu.memory_space<vmem>>, vector<8x128xf32>,
    } else {
    }
    %c0 = arith.constant 0 : index
    %c0_1 = arith.constant 0 : index
    %3 = vector.load %arg7[%c0, %c0_1] : memref<8x128xf32, #tpu.memory_space<vmem>>, vector<8x128xf32>
    %c0_2 = arith.constant 0 : index
    %c0_3 = arith.constant 0 : index
    %4 = vector.load %arg2[%c0_2, %c0_3] : memref<8x256xbf16, #tpu.memory_space<vmem>>, vector<8x256xbf16>
    %c0_4 = arith.constant 0 : index
    %c0_5 = arith.constant 0 : index
    %5 = vector.load %arg3[%c0_4, %c0_5] : memref<256x128xbf16, #tpu.memory_space<vmem>>, vector<256x128xbf16>
    %cst = arith.constant dense<0.000000e+00> : vector<8x128xf32>
    %6 = tpu.matmul %4, %5, %cst {dimension_numbers = #tpu.dot_dimension_numbers<[1], [0], [0], [1], [0, 0, 1, 1], [], []>} : vector<8x256xbf16>, vector<256x128xbf16>, vector<8x128xf32> -> vector<8x128xf32>
    %7 = arith.addf %3, %6 : vector<8x128xf32>
    %c0_6 = arith.constant 0 : index
    %c0_7 = arith.constant 0 : index
    %8 = vector.load %arg7[%c0_6, %c0_7] : memref<8x128xf32, #tpu.memory_space<vmem>>, vector<8x128xf32>
    tpu.vector_store %arg7[%c0_6, %c0_7], %7 {strides = array<i32>} : memref<8x128xf32, #tpu.memory_space<vmem>>, vector<8x128xf32>,
    %c2_i32 = arith.constant 2 : i32
    %9 = arith.cmpi eq, %arg1, %c2_i32 : i32
    %10 = arith.extui %9 : i1 to i32
    %c0_i32_8 = arith.constant 0 : i32
    %11 = arith.cmpi ne, %10, %c0_i32_8 : i32
    scf.if %11 {
      %c0_9 = arith.constant 0 : index
      %c0_10 = arith.constant 0 : index
      %12 = vector.load %arg7[%c0_9, %c0_10] : memref<8x128xf32, #tpu.memory_space<vmem>>, vector<8x128xf32>
      %13 = arith.mulf %12, %12 : vector<8x128xf32>
      %cst_11 = arith.constant dense<0.000000e+00> : vector<8xf32>
      %14 = vector.multi_reduction <add>, %13, %cst_11 [1] : vector<8x128xf32> to vector<8xf32>
      %15 = vector.shape_cast %14 : vector<8xf32> to vector<8x1xf32>
      %cst_12 = arith.constant 9.99999996E-13 : f32
      %16 = vector.broadcast %cst_12 : f32 to vector<8x1xf32>
      %17 = arith.maximumf %15, %16 : vector<8x1xf32>
      %18 = math.rsqrt %17 : vector<8x1xf32>
      %19 = vector.broadcast %18 : vector<8x1xf32> to vector<8x128xf32>
      %20 = arith.mulf %12, %19 : vector<8x128xf32>
      %c0_13 = arith.constant 0 : index
      %c0_14 = arith.constant 0 : index
      %21 = vector.load %arg4[%c0_13, %c0_14] : memref<1x128xf32, #tpu.memory_space<vmem>>, vector<1x128xf32>
      %22 = vector.broadcast %21 : vector<1x128xf32> to vector<8x128xf32>
      %23 = arith.addf %12, %22 : vector<8x128xf32>
      %24 = arith.mulf %23, %23 : vector<8x128xf32>
      %cst_15 = arith.constant dense<0.000000e+00> : vector<8xf32>
      %25 = vector.multi_reduction <add>, %24, %cst_15 [1] : vector<8x128xf32> to vector<8xf32>
      %26 = vector.shape_cast %25 : vector<8xf32> to vector<8x1xf32>
      %cst_16 = arith.constant 9.99999996E-13 : f32
      %27 = vector.broadcast %cst_16 : f32 to vector<8x1xf32>
      %28 = arith.maximumf %26, %27 : vector<8x1xf32>
      %29 = math.rsqrt %28 : vector<8x1xf32>
      %30 = vector.broadcast %29 : vector<8x1xf32> to vector<8x128xf32>
      %31 = arith.mulf %23, %30 : vector<8x128xf32>
      %32 = arith.truncf %20 : vector<8x128xf32> to vector<8x128xbf16>
      %c0_17 = arith.constant 0 : index
      %c0_18 = arith.constant 0 : index
      %33 = vector.load %arg5[%c0_17, %c0_18] : memref<8x128xbf16, #tpu.memory_space<vmem>>, vector<8x128xbf16>
      tpu.vector_store %arg5[%c0_17, %c0_18], %32 {strides = array<i32>} : memref<8x128xbf16, #tpu.memory_space<vmem>>, vector<8x128xbf16>,
      %34 = arith.addf %31, %20 : vector<8x128xf32>
      %35 = arith.mulf %34, %34 : vector<8x128xf32>
      %cst_19 = arith.constant dense<0.000000e+00> : vector<8xf32>
      %36 = vector.multi_reduction <add>, %35, %cst_19 [1] : vector<8x128xf32> to vector<8xf32>
      %37 = vector.shape_cast %36 : vector<8xf32> to vector<8x1xf32>
      %cst_20 = arith.constant 9.99999996E-13 : f32
      %38 = vector.broadcast %cst_20 : f32 to vector<8x1xf32>
      %39 = arith.maximumf %37, %38 : vector<8x1xf32>
      %40 = math.rsqrt %39 : vector<8x1xf32>
      %41 = vector.broadcast %40 : vector<8x1xf32> to vector<8x128xf32>
      %42 = arith.mulf %34, %41 : vector<8x128xf32>
      %43 = arith.truncf %42 : vector<8x128xf32> to vector<8x128xbf16>
      %c0_21 = arith.constant 0 : index
      %c0_22 = arith.constant 0 : index
      %44 = vector.load %arg6[%c0_21, %c0_22] : memref<8x128xbf16, #tpu.memory_space<vmem>>, vector<8x128xbf16>
      tpu.vector_store %arg6[%c0_21, %c0_22], %43 {strides = array<i32>} : memref<8x128xbf16, #tpu.memory_space<vmem>>, vector<8x128xbf16>,
    } else {
    }
    return
  }
  func.func @transform_0(%arg0: i32, %arg1: i32) -> (i32, i32) {
    %c0_i32 = arith.constant 0 : i32
    return %arg0, %arg1 : i32, i32
  }
  func.func @transform_1(%arg0: i32, %arg1: i32) -> (i32, i32) {
    %c0_i32 = arith.constant 0 : i32
    %c0_i32_0 = arith.constant 0 : i32
    return %arg1, %c0_i32 : i32, i32
  }
  func.func @transform_2(%arg0: i32, %arg1: i32) -> (i32, i32) {
    %c0_i32 = arith.constant 0 : i32
    %c0_i32_0 = arith.constant 0 : i32
    %c0_i32_1 = arith.constant 0 : i32
    return %c0_i32, %c0_i32_0 : i32, i32
  }
  func.func @transform_3(%arg0: i32, %arg1: i32) -> (i32, i32) {
    %c0_i32 = arith.constant 0 : i32
    %c0_i32_0 = arith.constant 0 : i32
    return %arg0, %c0_i32 : i32, i32
  }
  func.func @transform_4(%arg0: i32, %arg1: i32) -> (i32, i32) {
    %c0_i32 = arith.constant 0 : i32
    %c0_i32_0 = arith.constant 0 : i32
    return %arg0, %c0_i32 : i32, i32
  }
}

module attributes {stable_mosaic.version = 11 : i64} {
  func.func @_logits_loss_kernel(%arg0: i32, %arg1: memref<8x128xbf16, #tpu.memory_space<vmem>>, %arg2: memref<8x128xbf16, #tpu.memory_space<vmem>>, %arg3: memref<128x128xbf16, #tpu.memory_space<vmem>>, %arg4: memref<128x128xf32, #tpu.memory_space<vmem>>, %arg5: memref<128x128xf32, #tpu.memory_space<vmem>>, %arg6: memref<8x1xi32, #tpu.memory_space<vmem>>, %arg7: memref<3xf32, #tpu.memory_space<smem>>, %arg8: memref<8x128xf32, #tpu.memory_space<vmem>>, %arg9: memref<8x128xf32, #tpu.memory_space<vmem>>) attributes {dimension_semantics = [#tpu.dimension_semantics<parallel>], iteration_bounds = array<i64: 1>, scalar_prefetch = 0 : i64, scratch_operands = 0 : i64, tpu.core_type = #tpu.core_type<tc>, window_params = [{transform_indices = @transform_0, window_bounds = array<i64: 8, 128>}, {transform_indices = @transform_1, window_bounds = array<i64: 8, 128>}, {pipeline_mode = #tpu.pipeline_mode<synchronous>, transform_indices = @transform_2, window_bounds = array<i64: 128, 128>}, {pipeline_mode = #tpu.pipeline_mode<synchronous>, transform_indices = @transform_3, window_bounds = array<i64: 128, 128>}, {pipeline_mode = #tpu.pipeline_mode<synchronous>, transform_indices = @transform_4, window_bounds = array<i64: 128, 128>}, {transform_indices = @transform_5, window_bounds = array<i64: 8, 1>}, {transform_indices = @transform_6, window_bounds = array<i64: 3>}, {transform_indices = @transform_7, window_bounds = array<i64: 8, 128>}, {transform_indices = @transform_8, window_bounds = array<i64: 8, 128>}]} {
    %c0 = arith.constant 0 : index
    %0 = memref.load %arg7[%c0] : memref<3xf32, #tpu.memory_space<smem>>
    %c1 = arith.constant 1 : index
    %1 = memref.load %arg7[%c1] : memref<3xf32, #tpu.memory_space<smem>>
    %c2 = arith.constant 2 : index
    %2 = memref.load %arg7[%c2] : memref<3xf32, #tpu.memory_space<smem>>
    %3 = tpu.iota {dimensions = array<i32: 0>} : vector<8x1xi32>
    %c8_i32 = arith.constant 8 : i32
    %4 = arith.muli %arg0, %c8_i32 : i32
    %5 = vector.broadcast %4 : i32 to vector<8x1xi32>
    %6 = arith.addi %3, %5 : vector<8x1xi32>
    %c2_i32 = arith.constant 2 : i32
    %7 = vector.broadcast %c2_i32 : i32 to vector<8x1xi32>
    %8 = arith.cmpi slt, %6, %7 : vector<8x1xi32>
    %9 = arith.extui %8 : vector<8x1xi1> to vector<8x1xi32>
    %10 = arith.sitofp %9 : vector<8x1xi32> to vector<8x1xf32>
    %11 = tpu.iota {dimensions = array<i32: 1>} : vector<8x128xi32>
    %c0_0 = arith.constant 0 : index
    %c0_1 = arith.constant 0 : index
    %12 = vector.load %arg6[%c0_0, %c0_1] : memref<8x1xi32, #tpu.memory_space<vmem>>, vector<8x1xi32>
    %13 = vector.broadcast %12 : vector<8x1xi32> to vector<8x128xi32>
    %14 = arith.cmpi eq, %11, %13 : vector<8x128xi32>
    %c8_i32_2 = arith.constant 8 : i32
    %15 = vector.broadcast %c8_i32_2 : i32 to vector<8x128xi32>
    %16 = arith.cmpi slt, %11, %15 : vector<8x128xi32>
    %cst = arith.constant 0.000000e+00 : f32
    %cst_3 = arith.constant -1.000000e+30 : f32
    %17 = vector.broadcast %cst : f32 to vector<8x128xf32>
    %18 = vector.broadcast %cst_3 : f32 to vector<8x128xf32>
    %19 = arith.select %16, %17, %18 : vector<8x128xi1>, vector<8x128xf32>
    %c0_4 = arith.constant 0 : index
    %c0_5 = arith.constant 0 : index
    %20 = vector.load %arg1[%c0_4, %c0_5] : memref<8x128xbf16, #tpu.memory_space<vmem>>, vector<8x128xbf16>
    %c0_6 = arith.constant 0 : index
    %c0_7 = arith.constant 0 : index
    %21 = vector.load %arg2[%c0_6, %c0_7] : memref<8x128xbf16, #tpu.memory_space<vmem>>, vector<8x128xbf16>
    %c0_8 = arith.constant 0 : index
    %c0_9 = arith.constant 0 : index
    %22 = vector.load %arg3[%c0_8, %c0_9] : memref<128x128xbf16, #tpu.memory_space<vmem>>, vector<128x128xbf16>
    %cst_10 = arith.constant dense<0.000000e+00> : vector<8x128xf32>
    %23 = tpu.matmul %20, %22, %cst_10 {dimension_numbers = #tpu.dot_dimension_numbers<[1], [1], [0], [0], [0, 0, 1, 0], [], []>} : vector<8x128xbf16>, vector<128x128xbf16>, vector<8x128xf32> -> vector<8x128xf32>
    %24 = vector.broadcast %0 : f32 to vector<8x128xf32>
    %25 = arith.mulf %24, %23 : vector<8x128xf32>
    %c0_11 = arith.constant 0 : index
    %c0_12 = arith.constant 0 : index
    %26 = vector.load %arg8[%c0_11, %c0_12] : memref<8x128xf32, #tpu.memory_space<vmem>>, vector<8x128xf32>
    tpu.vector_store %arg8[%c0_11, %c0_12], %25 {strides = array<i32>} : memref<8x128xf32, #tpu.memory_space<vmem>>, vector<8x128xf32>,
    %27 = arith.addf %25, %19 : vector<8x128xf32>
    %cst_13 = arith.constant dense<0xFF800000> : vector<8xf32>
    %28 = vector.multi_reduction <maximumf>, %27, %cst_13 [1] : vector<8x128xf32> to vector<8xf32>
    %29 = vector.shape_cast %28 : vector<8xf32> to vector<8x1xf32>
    %30 = vector.broadcast %29 : vector<8x1xf32> to vector<8x128xf32>
    %31 = arith.subf %27, %30 : vector<8x128xf32>
    %32 = math.exp %31 : vector<8x128xf32>
    %cst_14 = arith.constant dense<0.000000e+00> : vector<8xf32>
    %33 = vector.multi_reduction <add>, %32, %cst_14 [1] : vector<8x128xf32> to vector<8xf32>
    %34 = vector.shape_cast %33 : vector<8xf32> to vector<8x1xf32>
    %35 = math.log %34 : vector<8x1xf32>
    %36 = arith.addf %29, %35 : vector<8x1xf32>
    %cst_15 = arith.constant 0.000000e+00 : f32
    %37 = vector.broadcast %cst_15 : f32 to vector<8x128xf32>
    %38 = arith.select %14, %27, %37 : vector<8x128xi1>, vector<8x128xf32>
    %cst_16 = arith.constant dense<0.000000e+00> : vector<8xf32>
    %39 = vector.multi_reduction <add>, %38, %cst_16 [1] : vector<8x128xf32> to vector<8xf32>
    %40 = vector.shape_cast %39 : vector<8xf32> to vector<8x1xf32>
    %41 = arith.subf %36, %40 : vector<8x1xf32>
    %42 = arith.mulf %41, %10 : vector<8x1xf32>
    %43 = vector.shape_cast %42 : vector<8x1xf32> to vector<1x8x1xf32>
    %cst_17 = arith.constant dense<0.000000e+00> : vector<1xf32>
    %44 = vector.multi_reduction <add>, %43, %cst_17 [1, 2] : vector<1x8x1xf32> to vector<1xf32>
    %45 = vector.shape_cast %44 : vector<1xf32> to vector<1x1x1xf32>
    %46 = vector.extract %45[0, 0, 0] : f32 from vector<1x1x1xf32>
    %cst_18 = arith.constant 5.000000e-01 : f32
    %47 = arith.mulf %46, %cst_18 : f32
    %c0_19 = arith.constant 0 : index
    %c0_20 = arith.constant 0 : index
    %48 = vector.load %arg5[%c0_19, %c0_20] : memref<128x128xf32, #tpu.memory_space<vmem>>, vector<128x128xf32>
    %49 = arith.mulf %48, %48 : vector<128x128xf32>
    %cst_21 = arith.constant dense<0.000000e+00> : vector<128xf32>
    %50 = vector.multi_reduction <add>, %49, %cst_21 [1] : vector<128x128xf32> to vector<128xf32>
    %51 = vector.shape_cast %50 : vector<128xf32> to vector<128x1xf32>
    %cst_22 = arith.constant 9.99999996E-13 : f32
    %52 = vector.broadcast %cst_22 : f32 to vector<128x1xf32>
    %53 = arith.maximumf %51, %52 : vector<128x1xf32>
    %54 = math.rsqrt %53 : vector<128x1xf32>
    %55 = vector.broadcast %54 : vector<128x1xf32> to vector<128x128xf32>
    %56 = arith.mulf %48, %55 : vector<128x128xf32>
    %57 = arith.truncf %56 : vector<128x128xf32> to vector<128x128xbf16>
    %cst_23 = arith.constant dense<0.000000e+00> : vector<8x128xf32>
    %58 = tpu.matmul %21, %57, %cst_23 {dimension_numbers = #tpu.dot_dimension_numbers<[1], [1], [0], [0], [0, 0, 1, 0], [], []>} : vector<8x128xbf16>, vector<128x128xbf16>, vector<8x128xf32> -> vector<8x128xf32>
    %cst_24 = arith.constant 1.000000e+01 : f32
    %59 = vector.broadcast %cst_24 : f32 to vector<8x128xf32>
    %60 = arith.mulf %59, %58 : vector<8x128xf32>
    %61 = arith.addf %60, %19 : vector<8x128xf32>
    %cst_25 = arith.constant dense<0xFF800000> : vector<8xf32>
    %62 = vector.multi_reduction <maximumf>, %61, %cst_25 [1] : vector<8x128xf32> to vector<8xf32>
    %63 = vector.shape_cast %62 : vector<8xf32> to vector<8x1xf32>
    %64 = vector.broadcast %63 : vector<8x1xf32> to vector<8x128xf32>
    %65 = arith.subf %61, %64 : vector<8x128xf32>
    %66 = math.exp %65 : vector<8x128xf32>
    %cst_26 = arith.constant dense<0.000000e+00> : vector<8xf32>
    %67 = vector.multi_reduction <add>, %66, %cst_26 [1] : vector<8x128xf32> to vector<8xf32>
    %68 = vector.shape_cast %67 : vector<8xf32> to vector<8x1xf32>
    %69 = math.log %68 : vector<8x1xf32>
    %70 = arith.addf %63, %69 : vector<8x1xf32>
    %cst_27 = arith.constant 0.000000e+00 : f32
    %71 = vector.broadcast %cst_27 : f32 to vector<8x128xf32>
    %72 = arith.select %14, %61, %71 : vector<8x128xi1>, vector<8x128xf32>
    %cst_28 = arith.constant dense<0.000000e+00> : vector<8xf32>
    %73 = vector.multi_reduction <add>, %72, %cst_28 [1] : vector<8x128xf32> to vector<8xf32>
    %74 = vector.shape_cast %73 : vector<8xf32> to vector<8x1xf32>
    %75 = arith.subf %70, %74 : vector<8x1xf32>
    %76 = arith.mulf %75, %10 : vector<8x1xf32>
    %77 = vector.shape_cast %76 : vector<8x1xf32> to vector<1x8x1xf32>
    %cst_29 = arith.constant dense<0.000000e+00> : vector<1xf32>
    %78 = vector.multi_reduction <add>, %77, %cst_29 [1, 2] : vector<1x8x1xf32> to vector<1xf32>
    %79 = vector.shape_cast %78 : vector<1xf32> to vector<1x1x1xf32>
    %80 = vector.extract %79[0, 0, 0] : f32 from vector<1x1x1xf32>
    %cst_30 = arith.constant 5.000000e-01 : f32
    %81 = arith.mulf %80, %cst_30 : f32
    %cst_31 = arith.constant 5.000000e-01 : f32
    %82 = arith.mulf %cst_31, %81 : f32
    %83 = arith.addf %47, %82 : f32
    %cst_32 = arith.constant dense<0.000000e+00> : vector<8x128xf32>
    %84 = tpu.matmul %20, %57, %cst_32 {dimension_numbers = #tpu.dot_dimension_numbers<[1], [1], [0], [0], [0, 0, 1, 0], [], []>} : vector<8x128xbf16>, vector<128x128xbf16>, vector<8x128xf32> -> vector<8x128xf32>
    %cst_33 = arith.constant 1.000000e+01 : f32
    %85 = vector.broadcast %cst_33 : f32 to vector<8x128xf32>
    %86 = arith.mulf %85, %84 : vector<8x128xf32>
    %87 = arith.addf %86, %19 : vector<8x128xf32>
    %cst_34 = arith.constant dense<0xFF800000> : vector<8xf32>
    %88 = vector.multi_reduction <maximumf>, %87, %cst_34 [1] : vector<8x128xf32> to vector<8xf32>
    %89 = vector.shape_cast %88 : vector<8xf32> to vector<8x1xf32>
    %90 = vector.broadcast %89 : vector<8x1xf32> to vector<8x128xf32>
    %91 = arith.subf %87, %90 : vector<8x128xf32>
    %92 = math.exp %91 : vector<8x128xf32>
    %cst_35 = arith.constant dense<0.000000e+00> : vector<8xf32>
    %93 = vector.multi_reduction <add>, %92, %cst_35 [1] : vector<8x128xf32> to vector<8xf32>
    %94 = vector.shape_cast %93 : vector<8xf32> to vector<8x1xf32>
    %95 = math.log %94 : vector<8x1xf32>
    %96 = arith.addf %89, %95 : vector<8x1xf32>
    %cst_36 = arith.constant 0.000000e+00 : f32
    %97 = vector.broadcast %cst_36 : f32 to vector<8x128xf32>
    %98 = arith.select %14, %87, %97 : vector<8x128xi1>, vector<8x128xf32>
    %cst_37 = arith.constant dense<0.000000e+00> : vector<8xf32>
    %99 = vector.multi_reduction <add>, %98, %cst_37 [1] : vector<8x128xf32> to vector<8xf32>
    %100 = vector.shape_cast %99 : vector<8xf32> to vector<8x1xf32>
    %101 = arith.subf %96, %100 : vector<8x1xf32>
    %102 = arith.mulf %101, %10 : vector<8x1xf32>
    %103 = vector.shape_cast %102 : vector<8x1xf32> to vector<1x8x1xf32>
    %cst_38 = arith.constant dense<0.000000e+00> : vector<1xf32>
    %104 = vector.multi_reduction <add>, %103, %cst_38 [1, 2] : vector<1x8x1xf32> to vector<1xf32>
    %105 = vector.shape_cast %104 : vector<1xf32> to vector<1x1x1xf32>
    %106 = vector.extract %105[0, 0, 0] : f32 from vector<1x1x1xf32>
    %cst_39 = arith.constant 5.000000e-01 : f32
    %107 = arith.mulf %106, %cst_39 : f32
    %cst_40 = arith.constant 5.000000e-01 : f32
    %108 = arith.mulf %cst_40, %107 : f32
    %109 = arith.addf %83, %108 : f32
    %110 = arith.extf %21 : vector<8x128xbf16> to vector<8x128xf32>
    %111 = arith.extf %20 : vector<8x128xbf16> to vector<8x128xf32>
    %112 = arith.mulf %110, %110 : vector<8x128xf32>
    %cst_41 = arith.constant dense<0.000000e+00> : vector<8xf32>
    %113 = vector.multi_reduction <add>, %112, %cst_41 [1] : vector<8x128xf32> to vector<8xf32>
    %114 = vector.shape_cast %113 : vector<8xf32> to vector<8x1xf32>
    %115 = math.sqrt %114 : vector<8x1xf32>
    %116 = arith.mulf %111, %111 : vector<8x128xf32>
    %cst_42 = arith.constant dense<0.000000e+00> : vector<8xf32>
    %117 = vector.multi_reduction <add>, %116, %cst_42 [1] : vector<8x128xf32> to vector<8xf32>
    %118 = vector.shape_cast %117 : vector<8xf32> to vector<8x1xf32>
    %119 = math.sqrt %118 : vector<8x1xf32>
    %120 = arith.mulf %110, %111 : vector<8x128xf32>
    %cst_43 = arith.constant dense<0.000000e+00> : vector<8xf32>
    %121 = vector.multi_reduction <add>, %120, %cst_43 [1] : vector<8x128xf32> to vector<8xf32>
    %122 = vector.shape_cast %121 : vector<8xf32> to vector<8x1xf32>
    %123 = arith.mulf %115, %119 : vector<8x1xf32>
    %cst_44 = arith.constant 1.000000e-07 : f32
    %124 = vector.broadcast %cst_44 : f32 to vector<8x1xf32>
    %125 = arith.maximumf %123, %124 : vector<8x1xf32>
    %126 = arith.divf %122, %125 : vector<8x1xf32>
    %cst_45 = arith.constant 1.000000e+00 : f32
    %127 = vector.broadcast %cst_45 : f32 to vector<8x1xf32>
    %128 = arith.subf %127, %126 : vector<8x1xf32>
    %129 = arith.mulf %128, %10 : vector<8x1xf32>
    %130 = vector.shape_cast %129 : vector<8x1xf32> to vector<1x8x1xf32>
    %cst_46 = arith.constant dense<0.000000e+00> : vector<1xf32>
    %131 = vector.multi_reduction <add>, %130, %cst_46 [1, 2] : vector<1x8x1xf32> to vector<1xf32>
    %132 = vector.shape_cast %131 : vector<1xf32> to vector<1x1x1xf32>
    %133 = vector.extract %132[0, 0, 0] : f32 from vector<1x1x1xf32>
    %134 = arith.mulf %2, %133 : f32
    %cst_47 = arith.constant 5.000000e-01 : f32
    %135 = arith.mulf %134, %cst_47 : f32
    %136 = arith.addf %109, %135 : f32
    %c0_i32 = arith.constant 0 : i32
    %137 = arith.cmpi eq, %arg0, %c0_i32 : i32
    %138 = arith.extui %137 : i1 to i32
    %139 = arith.sitofp %138 : i32 to f32
    %140 = tpu.iota {dimensions = array<i32: 0>} : vector<128x1xi32>
    %c8_i32_48 = arith.constant 8 : i32
    %141 = vector.broadcast %c8_i32_48 : i32 to vector<128x1xi32>
    %142 = arith.cmpi slt, %140, %141 : vector<128x1xi32>
    %143 = arith.extui %142 : vector<128x1xi1> to vector<128x1xi32>
    %144 = arith.sitofp %143 : vector<128x1xi32> to vector<128x1xf32>
    %c0_49 = arith.constant 0 : index
    %c0_50 = arith.constant 0 : index
    %145 = vector.load %arg3[%c0_49, %c0_50] : memref<128x128xbf16, #tpu.memory_space<vmem>>, vector<128x128xbf16>
    %146 = arith.extf %145 : vector<128x128xbf16> to vector<128x128xf32>
    %c0_51 = arith.constant 0 : index
    %c0_52 = arith.constant 0 : index
    %147 = vector.load %arg4[%c0_51, %c0_52] : memref<128x128xf32, #tpu.memory_space<vmem>>, vector<128x128xf32>
    %148 = arith.mulf %146, %146 : vector<128x128xf32>
    %cst_53 = arith.constant dense<0.000000e+00> : vector<128xf32>
    %149 = vector.multi_reduction <add>, %148, %cst_53 [1] : vector<128x128xf32> to vector<128xf32>
    %150 = vector.shape_cast %149 : vector<128xf32> to vector<128x1xf32>
    %151 = math.sqrt %150 : vector<128x1xf32>
    %152 = arith.mulf %147, %147 : vector<128x128xf32>
    %cst_54 = arith.constant dense<0.000000e+00> : vector<128xf32>
    %153 = vector.multi_reduction <add>, %152, %cst_54 [1] : vector<128x128xf32> to vector<128xf32>
    %154 = vector.shape_cast %153 : vector<128xf32> to vector<128x1xf32>
    %155 = math.sqrt %154 : vector<128x1xf32>
    %156 = arith.mulf %146, %147 : vector<128x128xf32>
    %cst_55 = arith.constant dense<0.000000e+00> : vector<128xf32>
    %157 = vector.multi_reduction <add>, %156, %cst_55 [1] : vector<128x128xf32> to vector<128xf32>
    %158 = vector.shape_cast %157 : vector<128xf32> to vector<128x1xf32>
    %159 = arith.mulf %151, %155 : vector<128x1xf32>
    %cst_56 = arith.constant 1.000000e-07 : f32
    %160 = vector.broadcast %cst_56 : f32 to vector<128x1xf32>
    %161 = arith.maximumf %159, %160 : vector<128x1xf32>
    %162 = arith.divf %158, %161 : vector<128x1xf32>
    %163 = arith.mulf %139, %1 : f32
    %cst_57 = arith.constant 1.000000e+00 : f32
    %164 = vector.broadcast %cst_57 : f32 to vector<128x1xf32>
    %165 = arith.subf %164, %162 : vector<128x1xf32>
    %166 = arith.mulf %165, %144 : vector<128x1xf32>
    %167 = vector.shape_cast %166 : vector<128x1xf32> to vector<1x128x1xf32>
    %cst_58 = arith.constant dense<0.000000e+00> : vector<1xf32>
    %168 = vector.multi_reduction <add>, %167, %cst_58 [1, 2] : vector<1x128x1xf32> to vector<1xf32>
    %169 = vector.shape_cast %168 : vector<1xf32> to vector<1x1x1xf32>
    %170 = vector.extract %169[0, 0, 0] : f32 from vector<1x1x1xf32>
    %171 = arith.mulf %163, %170 : f32
    %cst_59 = arith.constant 8.000000e+00 : f32
    %172 = arith.divf %171, %cst_59 : f32
    %173 = arith.addf %136, %172 : f32
    %174 = tpu.iota {dimensions = array<i32: 0>} : vector<8x128xi32>
    %175 = tpu.iota {dimensions = array<i32: 1>} : vector<8x128xi32>
    %c0_i32_60 = arith.constant 0 : i32
    %176 = vector.broadcast %c0_i32_60 : i32 to vector<8x128xi32>
    %177 = arith.cmpi eq, %174, %176 : vector<8x128xi32>
    %c0_i32_61 = arith.constant 0 : i32
    %178 = vector.broadcast %c0_i32_61 : i32 to vector<8x128xi32>
    %179 = arith.cmpi eq, %175, %178 : vector<8x128xi32>
    %180 = arith.andi %177, %179 : vector<8x128xi1>
    %cst_62 = arith.constant 0.000000e+00 : f32
    %181 = vector.broadcast %173 : f32 to vector<8x128xf32>
    %182 = vector.broadcast %cst_62 : f32 to vector<8x128xf32>
    %183 = arith.select %180, %181, %182 : vector<8x128xi1>, vector<8x128xf32>
    %c0_63 = arith.constant 0 : index
    %c0_64 = arith.constant 0 : index
    %184 = vector.load %arg9[%c0_63, %c0_64] : memref<8x128xf32, #tpu.memory_space<vmem>>, vector<8x128xf32>
    tpu.vector_store %arg9[%c0_63, %c0_64], %183 {strides = array<i32>} : memref<8x128xf32, #tpu.memory_space<vmem>>, vector<8x128xf32>,
    return
  }
  func.func @transform_0(%arg0: i32) -> (i32, i32) {
    %c0_i32 = arith.constant 0 : i32
    %c0_i32_0 = arith.constant 0 : i32
    return %arg0, %c0_i32 : i32, i32
  }
  func.func @transform_1(%arg0: i32) -> (i32, i32) {
    %c0_i32 = arith.constant 0 : i32
    %c0_i32_0 = arith.constant 0 : i32
    return %arg0, %c0_i32 : i32, i32
  }
  func.func @transform_2(%arg0: i32) -> (i32, i32) {
    %c0_i32 = arith.constant 0 : i32
    %c0_i32_0 = arith.constant 0 : i32
    %c0_i32_1 = arith.constant 0 : i32
    return %c0_i32, %c0_i32_0 : i32, i32
  }
  func.func @transform_3(%arg0: i32) -> (i32, i32) {
    %c0_i32 = arith.constant 0 : i32
    %c0_i32_0 = arith.constant 0 : i32
    %c0_i32_1 = arith.constant 0 : i32
    return %c0_i32, %c0_i32_0 : i32, i32
  }
  func.func @transform_4(%arg0: i32) -> (i32, i32) {
    %c0_i32 = arith.constant 0 : i32
    %c0_i32_0 = arith.constant 0 : i32
    %c0_i32_1 = arith.constant 0 : i32
    return %c0_i32, %c0_i32_0 : i32, i32
  }
  func.func @transform_5(%arg0: i32) -> (i32, i32) {
    %c0_i32 = arith.constant 0 : i32
    %c0_i32_0 = arith.constant 0 : i32
    return %arg0, %c0_i32 : i32, i32
  }
  func.func @transform_6(%arg0: i32) -> i32 {
    %c0_i32 = arith.constant 0 : i32
    %c0_i32_0 = arith.constant 0 : i32
    return %c0_i32 : i32
  }
  func.func @transform_7(%arg0: i32) -> (i32, i32) {
    %c0_i32 = arith.constant 0 : i32
    %c0_i32_0 = arith.constant 0 : i32
    return %arg0, %c0_i32 : i32, i32
  }
  func.func @transform_8(%arg0: i32) -> (i32, i32) {
    %c0_i32 = arith.constant 0 : i32
    %c0_i32_0 = arith.constant 0 : i32
    return %arg0, %c0_i32 : i32, i32
  }
}

</mosaic_0001>

<bundles_post_ra>
// kernel: custom_clip_forward.3
= control target key start
LH: loop header
LB: loop body
LE: loop exit
PB: predicated region body
PF: predicated region fallthrough
CT: control target
= control target key end

     0   :  { %s737_s15 = smov 0   ;;  %s739_s16 = smov 0   ;;  %s803_s0 = inlined_call_operand.vmem [shape: bf16[8,768], index: 0, kind: input, shape index: {}]   ;;  %s804_s1 = inlined_call_operand.vmem [shape: bf16[768,128], index: 1, kind: input, shape index: {}]   ;;  %s805_s2 = inlined_call_operand.vmem [shape: f32[1,128], index: 2, kind: input, shape index: {}]   ;;  %s806_s3 = inlined_call_operand.vmem [shape: bf16[8,128], index: 3, kind: output, shape index: {0}]   ;;  %s807_s4 = inlined_call_operand.vmem [shape: bf16[8,128], index: 4, kind: output, shape index: {1}]  }
   0x1   :  { %s741_s17 = smov 0  }
   0x2 LB: > { %s24_s18 = sadd.s32 1, %s705_s16  ;;  %p586_p0 = scmp.ge.s32.totalorder %s709_s17, 1  ;;  %s709_s17 = sphi %s741_s17, %s15_s17   ;;  %s705_s16 = sphi %s739_s16, %s809_s16   ;;  %s701_s15 = sphi %s737_s15, %s808_s15  }
   0x3   : > { %p25_p1 = scmp.ge.s32.totalorder %s24_s18, 3  ;;  %p195_p2 = scmp.lt.s32.totalorder %s709_s17, 4 }
   0x5   : > { %s811_s18 = smov (%p25_p1, %s24_s18), 0  ;;  %p196_p3 = pnand %p586_p0, %p195_p2 }
   0x6   : > { %s587_s19 = sshll.u32 (!%p196_p3), %s701_s15, 1  ;;  %s589_s20 = sshll.u32 (!%p196_p3), %s701_s15, 5 }
   0x7   : > { %199 = sbr.rel (%p196_p3) target bundleno = 609 (0x261), region = 32  ;;  %p236_p4 = scmp.lt.s32.totalorder (!%p196_p3), %s587_s19, 5 }
   0x8   : > { %p244_p5 = scmp.lt.s32.totalorder (!%p196_p3), %s589_s20, 95  ;;  %p591_p6 = scmp.ne.s32.totalorder (!%p196_p3), %s701_s15, 0 }
   0xe   : > { %s813_s19 = smov (!%p236_p4, %s587_s19), 5  ;;  %s815_s20 = smov (!%p244_p5, %s589_s20), 95 }
   0xf   : > { %s588_s21 = sshll.u32 %s813_s19, 2  ;;  %s590_s25 = sshll.u32 %s815_s20, 2  ;;  %v711_v0 = vmov (!%p591_p6), 0.0  }
  0x10   : > { %s241_s24 = scalar_lea.vmem %s803_s0, %s588_s21  ;;  %s765_s28 = scalar_lea.vmem %s804_s1, %s590_s25  ;;  %262 = vst [vmem:[#allocation2] sm:$0xff] (!%p591_p6), %v711_v0 }
  0x11   : > { %261 = sbr.rel (%p591_p6) target bundleno = 24 (0x18), region = 36 }
  0x18 PF: > { %v663_v1 = vld [vmem:[%s765_s28 + $0x40] sm:$0xff]   ;;  %v665_v3 = vld [vmem:[%s765_s28 + $0x48] sm:$0xff]   ;;  %v667_v5 = vld [vmem:[%s765_s28 + $0x50] sm:$0xff]   ;;  %p610_p7 = scmp.ne.s32.totalorder %s701_s15, 2 }
  0x19   : > { %v664_v2 = vld [vmem:[%s765_s28] sm:$0xff]   ;;  %616 = vmatprep.subr.bf16.mxu0 %v663_v1  ;;  %v666_v4 = vld [vmem:[%s765_s28 + $0x8] sm:$0xff]   ;;  %v668_v6 = vld [vmem:[%s765_s28 + $0x10] sm:$0xff]  }
  0x1a   : > { %617 = vmatpush3.bf16.msra.mxu0 %v664_v2  ;;  %v669_v7 = vld [vmem:[%s765_s28 + $0x58] sm:$0xff]   ;;  %v671_v9 = vld [vmem:[%s765_s28 + $0x60] sm:$0xff]   ;;  %v673_v11 = vld [vmem:[%s765_s28 + $0x68] sm:$0xff]  }
  0x1b   : > { %618 = vmatprep.subr.bf16.mxu0 %v665_v3  ;;  %v670_v8 = vld [vmem:[%s765_s28 + $0x18] sm:$0xff]   ;;  %v672_v10 = vld [vmem:[%s765_s28 + $0x20] sm:$0xff]   ;;  %v674_v14 = vld [vmem:[%s765_s28 + $0x28] sm:$0xff]  }
  0x1c   : > { %v264_v12 = vld [vmem:[%s241_s24] sm:$0xff]  ;;  %v675_v15 = vld [vmem:[%s765_s28 + $0x70] sm:$0xff]   ;;  %v677_v17 = vld [vmem:[%s765_s28 + $0x78] sm:$0xff]  }
  0x1d   : > { %v593_v13 = vcombine.high %v264_v12, %v264_v12  ;;  %v676_v16 = vld [vmem:[%s765_s28 + $0x30] sm:$0xff]   ;;  %v678_v18 = vld [vmem:[%s765_s28 + $0x38] sm:$0xff]   ;;  %v592_v19 = vcombine.low %v264_v12, %v264_v12  ;;  %v263_v21 = vld [vmem:[#allocation2] sm:$0xff] }
  0x1e   : > { %619 = vmatpush3.bf16.msra.mxu0 %v666_v4  ;;  %v611_v28 = vld [vmem:[%s805_s2] ss:$0 sm:$0xff] (!%p610_p7) }
  0x1f   : > { %620 = vmatprep.subr.bf16.mxu0 %v667_v5  ;;  %432 = vmatprep.mubr.bf16.mxu0 %v593_v13 }
  0x22   : > { %621 = vmatpush3.bf16.msra.mxu0 %v668_v6 }
  0x23   : > { %622 = vmatprep.subr.bf16.mxu0 %v669_v7 }
  0x26   : > { %623 = vmatpush3.bf16.msra.mxu0 %v670_v8 }
  0x27   : > { %624 = vmatprep.subr.bf16.mxu0 %v671_v9 }
  0x2a   : > { %625 = vmatpush3.bf16.msra.mxu0 %v672_v10 }
  0x2b   : > { %626 = vmatprep.subr.bf16.mxu0 %v673_v11 }
  0x2e   : > { %627 = vmatpush3.bf16.msra.mxu0 %v674_v14 }
  0x2f   : > { %628 = vmatprep.subr.bf16.mxu0 %v675_v15 }
  0x32   : > { %629 = vmatpush3.bf16.msra.mxu0 %v676_v16 }
  0x33   : > { %630 = vmatprep.subr.bf16.mxu0 %v677_v17 }
  0x36   : > { %631 = vmatpush3.bf16.msra.mxu0 %v678_v18 }
  0x39   : > { %433 = vmatmul.mubr.bf16.vlgmr.msra.gmra.mrb[0].mxu0 %v592_v19 }
 0x10c   : > { %v632_v20 = vpop.f32.mrb[0].mxu0  ;;  %445 = sbr.rel (%p610_p7) target bundleno = 609 (0x261), region = 40 }
 0x10d   : > { %v633_v22 = vpop.f32.mrb[1].mxu0 }
 0x10e   : > { %v634_v23 = vadd.f32 %v633_v22, %v632_v20  ;;  %v635_v24 = vpop.f32.mrb[2].mxu0 }
 0x10f   : > { %v636_v25 = vpop.f32.mrb[3].mxu0 }
 0x110   : > { %v440_v26 = vadd.f32 %v634_v23, %v263_v21 }
 0x112   : > { %441 = vst [vmem:[#allocation2] sm:$0xff] %v440_v26 }
 0x119   : > { %v446_v27 = vld [vmem:[#allocation2] sm:$0xff] }
 0x11a   : > { %v447_v29 = vmul.f32 %v446_v27, %v446_v27  ;;  %v460_v30 = vadd.f32 %v611_v28, %v446_v27 }
 0x11c   : > { %448 = vadd.xlane.f32.xlu0 %v447_v29  ;;  %v461_v31 = vmul.f32 %v460_v30, %v460_v30 }
 0x120   : > { %462 = vadd.xlane.f32.xlu0 %v461_v31 }
 0x1a9   : > { %v449_v32 = vpop.xlane.xlu0 %448 }
 0x1aa   : > { %v450_v33 = vmax.f32 %v449_v32, 1e-12 }
 0x1ac   : > { %681 = vrsqrt.f32 %v450_v33 }
 0x1ad   : > { %v463_v34 = vpop.xlane.xlu0 %462 }
 0x1ae   : > { %v464_v35 = vmax.f32 %v463_v34, 1e-12 }
 0x1b0   : > { %683 = vrsqrt.f32 %v464_v35 }
 0x1b6   : > { %v682_v36 = vpop.eup %681 }
 0x1b7   : > { %v452_v37 = vmul.f32 %v682_v36, %v446_v27 }
 0x1b9   : > { %v467_v38 = vpack.c.bf16 %v452_v37, %v452_v37 }
 0x1ba   : > { %v684_v39 = vpop.eup %683 }
 0x1bb   : > { %v466_v40 = vmul.f32 %v684_v39, %v460_v30  ;;  %468 = vst [vmem:[%s806_s3] sm:$0xf] %v467_v38 }
 0x1bd   : > { %v469_v41 = vadd.f32 %v466_v40, %v452_v37 }
 0x1bf   : > { %v470_v42 = vmul.f32 %v469_v41, %v469_v41 }
 0x1c1   : > { %471 = vadd.xlane.f32.xlu1 %v470_v42 }
 0x24e   : > { %v472_v43 = vpop.xlane.xlu1 %471 }
 0x24f   : > { %v473_v44 = vmax.f32 %v472_v43, 1e-12 }
 0x251   : > { %685 = vrsqrt.f32 %v473_v44 }
 0x25b   : > { %v686_v45 = vpop.eup %685 }
 0x25c   : > { %v475_v46 = vmul.f32 %v686_v45, %v469_v41 }
 0x25e   : > { %v476_v47 = vpack.c.bf16 %v475_v46, %v475_v46 }
 0x260   : > { %477 = vst [vmem:[%s807_s4] sm:$0xf] %v476_v47 }
 0x261 PF: > { %s15_s17 = sadd.s32 1, %s709_s17   ;;  %s808_s15 = smov %s705_s16 }
 0x262   : > { %p12_p8 = scmp.ge.s32.totalorder %s15_s17, 5   ;;  %s809_s16 = smov %s811_s18 }
 0x264   :  { %14 = sbr.rel (!%p12_p8) target bundleno = 2 (0x2), region = 85 }

// kernel: custom_clip_forward.4
= control target key start
LH: loop header
LB: loop body
LE: loop exit
PB: predicated region body
PF: predicated region fallthrough
CT: control target
= control target key end

     0   :  { %v384_v0 = vmov 0.0   ;;  %vm385_vm0 = vmmov 0   ;;  %s502_s1 = inlined_call_operand.vmem [shape: bf16[128,128], index: 1, kind: input, shape index: {}]   ;;  %s503_s0 = inlined_call_operand.vmem [shape: f32[8,128], index: 0, kind: input, shape index: {}]   ;;  %s504_s4 = inlined_call_operand.vmem [shape: bf16[128,128], index: 4, kind: input, shape index: {}]   ;;  %s505_s2 = inlined_call_operand.vmem [shape: f32[1,128], index: 2, kind: input, shape index: {}]   ;;  %s506_s3 = inlined_call_operand.vmem [shape: f32[1,128], index: 3, kind: input, shape index: {}]   ;;  %s507_s5 = inlined_call_operand.vmem [shape: f32[8,128], index: 5, kind: input, shape index: {}]   ;;  %s508_s6 = inlined_call_operand.vmem [shape: bf16[8,128], index: 6, kind: output, shape index: {}]  }
   0x1   :  { %320 = vmatprep.subr.bf16.mxu0 %v384_v0  ;;  %v362_v1 = vld [vmem:[%s502_s1] sm:$0xff]   ;;  %336 = vmatprep.mubr.msk.bf16.mxu0 %vm385_vm0, %v384_v0  ;;  %v363_v2 = vld [vmem:[%s502_s1 + $0x8] sm:$0xff]   ;;  %v364_v3 = vld [vmem:[%s502_s1 + $0x10] sm:$0xff]  }
   0x2   :  { %340 = vmatprep.subr.bf16.mxu1 %v384_v0  ;;  %356 = vmatprep.mubr.msk.bf16.mxu1 %vm385_vm0, %v384_v0  ;;  %v365_v4 = vld [vmem:[%s502_s1 + $0x18] sm:$0xff]   ;;  %v366_v5 = vld [vmem:[%s502_s1 + $0x20] sm:$0xff]   ;;  %v367_v6 = vld [vmem:[%s502_s1 + $0x28] sm:$0xff]  }
   0x3   :  { %321 = vmatpush3.bf16.msra.mxu0 %v362_v1  ;;  %v368_v7 = vld [vmem:[%s502_s1 + $0x30] sm:$0xff]   ;;  %v369_v8 = vld [vmem:[%s502_s1 + $0x38] sm:$0xff]   ;;  %v24_v9 = vld [vmem:[%s503_s0] sm:$0xff] }
   0x4   :  { %322 = vmatprep.subr.bf16.mxu0 %v384_v0  ;;  %v41_v10 = vpack.c.bf16 %v24_v9, %v24_v9  ;;  %v370_v16 = vld [vmem:[%s504_s4] sm:$0xff]   ;;  %v371_v17 = vld [vmem:[%s504_s4 + $0x8] sm:$0xff]   ;;  %v372_v22 = vld [vmem:[%s504_s4 + $0x10] sm:$0xff]  }
   0x5   :  { %341 = vmatpush3.bf16.msra.mxu1 %v370_v16  ;;  %v373_v23 = vld [vmem:[%s504_s4 + $0x18] sm:$0xff]   ;;  %v374_v24 = vld [vmem:[%s504_s4 + $0x20] sm:$0xff]   ;;  %v375_v25 = vld [vmem:[%s504_s4 + $0x28] sm:$0xff]  }
   0x6   :  { %342 = vmatprep.subr.bf16.mxu1 %v384_v0  ;;  %v376_v26 = vld [vmem:[%s504_s4 + $0x30] sm:$0xff]   ;;  %v377_v27 = vld [vmem:[%s504_s4 + $0x38] sm:$0xff]   ;;  %v292_v32 = vld [vmem:[%s505_s2] ss:$0 sm:$0xff] }
   0x7   :  { %323 = vmatpush3.bf16.msra.mxu0 %v363_v2  ;;  %v293_v34 = vld [vmem:[%s506_s3] ss:$0 sm:$0xff] }
   0x8   :  { %324 = vmatprep.subr.bf16.mxu0 %v384_v0  ;;  %v270_v46 = vld [vmem:[%s507_s5] sm:$0xff] }
   0x9   :  { %343 = vmatpush3.bf16.msra.mxu1 %v371_v17 }
   0xa   :  { %344 = vmatprep.subr.bf16.mxu1 %v384_v0 }
   0xb   :  { %325 = vmatpush3.bf16.msra.mxu0 %v364_v3 }
   0xc   :  { %326 = vmatprep.subr.bf16.mxu0 %v384_v0 }
   0xd   :  { %345 = vmatpush3.bf16.msra.mxu1 %v372_v22 }
   0xe   :  { %346 = vmatprep.subr.bf16.mxu1 %v384_v0 }
   0xf   :  { %327 = vmatpush3.bf16.msra.mxu0 %v365_v4 }
  0x10   :  { %328 = vmatprep.subr.bf16.mxu0 %v384_v0 }
  0x11   :  { %347 = vmatpush3.bf16.msra.mxu1 %v373_v23 }
  0x12   :  { %348 = vmatprep.subr.bf16.mxu1 %v384_v0 }
  0x13   :  { %329 = vmatpush3.bf16.msra.mxu0 %v366_v5 }
  0x14   :  { %330 = vmatprep.subr.bf16.mxu0 %v384_v0 }
  0x15   :  { %349 = vmatpush3.bf16.msra.mxu1 %v374_v24 }
  0x16   :  { %350 = vmatprep.subr.bf16.mxu1 %v384_v0 }
  0x17   :  { %331 = vmatpush3.bf16.msra.mxu0 %v367_v6 }
  0x18   :  { %332 = vmatprep.subr.bf16.mxu0 %v384_v0 }
  0x19   :  { %351 = vmatpush3.bf16.msra.mxu1 %v375_v25 }
  0x1a   :  { %352 = vmatprep.subr.bf16.mxu1 %v384_v0 }
  0x1b   :  { %333 = vmatpush3.bf16.msra.mxu0 %v368_v7 }
  0x1c   :  { %334 = vmatprep.subr.bf16.mxu0 %v384_v0 }
  0x1d   :  { %353 = vmatpush3.bf16.msra.mxu1 %v376_v26 }
  0x1e   :  { %354 = vmatprep.subr.bf16.mxu1 %v384_v0 }
  0x1f   :  { %335 = vmatpush3.bf16.msra.mxu0 %v369_v8 }
  0x21   :  { %355 = vmatpush3.bf16.msra.mxu1 %v377_v27 }
  0x22   :  { %337 = vmatmul.mubr.bf16.vlgmr.msra.gmra.mrb[0].mxu0 %v41_v10 }
  0xf5   :  { %v124_v11 = vpop.f32.mrb[0].mxu0 }
  0xf6   :  { %v130_v12 = vadd.f32 %v124_v11, %v24_v9  ;;  %v338_v13 = vpop.f32.mrb[1].mxu0 }
  0xf7   :  { %v127_v14 = vpop.f32.mrb[2].mxu0 }
  0xf8   :  { %131 = vadd.xlane.f32.xlu0 %v130_v12  ;;  %v339_v15 = vpop.f32.mrb[3].mxu0 }
 0x185   :  { %v132_v18 = vpop.xlane.xlu0 %131 }
 0x186   :  { %v134_v19 = vmul.f32 0.0078125, %v132_v18 }
 0x188   :  { %v135_v20 = vsub.f32 %v130_v12, %v134_v19 }
 0x18a   :  { %v136_v21 = vmul.f32 %v135_v20, %v135_v20 }
 0x18c   :  { %137 = vadd.xlane.f32.xlu0 %v136_v21 }
 0x219   :  { %v138_v28 = vpop.xlane.xlu0 %137 }
 0x21a   :  { %v139_v29 = vmul.f32 0.0078125, %v138_v28 }
 0x21c   :  { %v140_v30 = vadd.f32 1e-05, %v139_v29 }
 0x21e   :  { %378 = vrsqrt.f32 %v140_v30 }
 0x228   :  { %v379_v31 = vpop.eup %378 }
 0x229   :  { %v142_v33 = vmul.f32 %v379_v31, %v135_v20 }
 0x22b   :  { %v150_v35 = vmul.f32 %v292_v32, %v142_v33 }
 0x22d   :  { %v158_v36 = vadd.f32 %v293_v34, %v150_v35 }
 0x22f   :  { %v175_v37 = vpack.c.bf16 %v158_v36, %v158_v36 }
 0x231   :  { %357 = vmatmul.mubr.bf16.vlgmr.msra.gmra.mrb[0].mxu1 %v175_v37 }
 0x304   :  { %v258_v38 = vpop.f32.mrb[0].mxu1 }
 0x305   :  { %v358_v39 = vpop.f32.mrb[1].mxu1  ;;  %v264_v40 = vmul.f32 %v258_v38, %v258_v38 }
 0x306   :  { %v261_v41 = vpop.f32.mrb[2].mxu1 }
 0x307   :  { %265 = vadd.xlane.f32.xlu1 %v264_v40  ;;  %v359_v42 = vpop.f32.mrb[3].mxu1 }
 0x394   :  { %v266_v43 = vpop.xlane.xlu1 %265 }
 0x395   :  { %v267_v44 = vmax.f32 %v266_v43, 1e-12 }
 0x397   :  { %380 = vrsqrt.f32 %v267_v44 }
 0x3a1   :  { %v381_v45 = vpop.eup %380 }
 0x3a2   :  { %v269_v47 = vmul.f32 %v381_v45, %v258_v38 }
 0x3a4   :  { %v271_v48 = vadd.f32 %v270_v46, %v269_v47 }
 0x3a6   :  { %v272_v49 = vmul.f32 %v271_v48, %v271_v48 }
 0x3a8   :  { %273 = vadd.xlane.f32.xlu1 %v272_v49 }
 0x435   :  { %v274_v50 = vpop.xlane.xlu1 %273 }
 0x436   :  { %v275_v51 = vmax.f32 %v274_v50, 1e-12 }
 0x438   :  { %382 = vrsqrt.f32 %v275_v51 }
 0x442   :  { %v383_v52 = vpop.eup %382 }
 0x443   :  { %v277_v53 = vmul.f32 %v383_v52, %v271_v48 }
 0x445   :  { %v278_v54 = vpack.c.bf16 %v277_v53, %v277_v53 }
 0x447   :  { %279 = vst [vmem:[%s508_s6] sm:$0xf] %v278_v54 }

// kernel: custom_clip_forward.5
= control target key start
LH: loop header
LB: loop body
LE: loop exit
PB: predicated region body
PF: predicated region fallthrough
CT: control target
= control target key end

     0   :  { %14 = vsyncpa [#allocation3], 0  ;;  %s2250_s0 = inlined_call_operand.vmem [shape: bf16[8,128], index: 0, kind: input, shape index: {}]   ;;  %s2251_s1 = inlined_call_operand.vmem [shape: bf16[8,128], index: 1, kind: input, shape index: {}]   ;;  %s2252_s2 = inlined_call_operand.vmem [shape: bf16[128,128], index: 2, kind: input, shape index: {}]   ;;  %s2253_s3 = inlined_call_operand.vmem [shape: f32[128,128], index: 3, kind: input, shape index: {}]   ;;  %s2254_s4 = inlined_call_operand.vmem [shape: f32[128,128], index: 4, kind: input, shape index: {}]   ;;  %s2255_s5 = inlined_call_operand.vmem [shape: s32[8,1], index: 5, kind: input, shape index: {}]   ;;  %s2256_s6 = inlined_call_operand.vmem [shape: f32[3], index: 6, kind: input, shape index: {}]   ;;  %s2257_s7 = inlined_call_operand.vmem [shape: f32[8,128], index: 7, kind: output, shape index: {0}]   ;;  %s2258_s8 = inlined_call_operand.vmem [shape: f32[8,128], index: 8, kind: output, shape index: {1}]  }
   0x1   :  { %s33_s29 = sshll.u32 %s2256_s6, 4  ;;  %s34_s29 = int_to_ptr.vmem [resolvable:$true] %s33_s29 }
   0x2   :  { %s1450_s30 = scalar_lea.vmem %s34_s29, 16  ;;  %p1455_p1 = scmp.lt.s32.totalorder %s34_s29, %s34_s29 }
   0x3   :  { %p1451_p0 = scmp.ne.s32.totalorder %s34_s29, %s1450_s30  ;;  %p1456_p2 = scmp.lt.s32.totalorder %s1450_s30, %s1450_s30 }
   0x5   :  { %p1457_p3 = por %p1456_p2, %p1455_p1 }
   0x7   :  { %p1458_p4 = pnand %p1457_p3, %p1451_p0 }
   0x9   :  { %1461 = shalt.err (!%p1458_p4)
}
   0xa   :  { %s1464_s9 = smov [#allocation2]  }
   0xb   :  { %36 = dma.vmem_to_smem %s34_s29, 16, %s1464_s9, [#allocation3]  }
   0xc   :  { %1462 = dma.done.wait [#allocation3], 16  }
   0xd   :  { %1463 = vsyncadd [#allocation3], 4294967280 }
   0xe   :  { %40 = sfence }
   0xf   :  { %v1520_v0 = vld [vmem:[%s2254_s4] sm:$0xff]  ;;  %v1465_v1 = vmov 0.0   ;;  %v1531_v4 = vld [vmem:[%s2254_s4 + $0x10] sm:$0xff]  ;;  %v1536_v5 = vld [vmem:[%s2254_s4 + $0x8] sm:$0xff]  ;;  %vm1466_vm0 = vmmov 0   ;;  %s42_s13 = sld [smem:[#allocation2]] }
  0x10   :  { %1219 = vmatprep.subr.bf16.mxu0 %v1465_v1  ;;  %v215_v2 = vmul.f32 %v1520_v0, %v1520_v0  ;;  %v1296_v3 = vld [vmem:[%s2252_s2] sm:$0xff]   ;;  %1239 = vmatprep.subr.bf16.mxu1 %v1465_v1  ;;  %v217_v6 = vmul.f32 %v1531_v4, %v1531_v4  ;;  %v1544_v7 = vld [vmem:[%s2254_s4 + $0x18] sm:$0xff]  ;;  %v216_v8 = vmul.f32 %v1536_v5, %v1536_v5  ;;  %v1563_v11 = vld [vmem:[%s2254_s4 + $0x28] sm:$0xff] }
  0x11   :  { %1235 = vmatprep.mubr.msk.bf16.mxu0 %vm1466_vm0, %v1465_v1  ;;  %1255 = vmatprep.mubr.msk.bf16.mxu1 %vm1466_vm0, %v1465_v1  ;;  %v218_v9 = vmul.f32 %v1544_v7, %v1544_v7  ;;  %v1558_v10 = vld [vmem:[%s2254_s4 + $0x20] sm:$0xff]  ;;  %v1297_v12 = vld [vmem:[%s2252_s2 + $0x8] sm:$0xff]   ;;  %v220_v14 = vmul.f32 %v1563_v11, %v1563_v11  ;;  %v1575_v15 = vld [vmem:[%s2254_s4 + $0x30] sm:$0xff] }
  0x12   :  { %231 = vadd.xlane.f32.xlu0 %v215_v2  ;;  %1220 = vmatpush3.bf16.xpose.msra.mxu0 %v1296_v3  ;;  %v219_v13 = vmul.f32 %v1558_v10, %v1558_v10  ;;  %v1580_v16 = vld [vmem:[%s2254_s4 + $0x38] sm:$0xff]  ;;  %v221_v17 = vmul.f32 %v1575_v15, %v1575_v15  ;;  %v1590_v19 = vld [vmem:[%s2254_s4 + $0x40] sm:$0xff]  ;;  %v1595_v20 = vld [vmem:[%s2254_s4 + $0x48] sm:$0xff] }
  0x13   :  { %235 = vadd.xlane.f32.xlu1 %v217_v6  ;;  %1221 = vmatprep.subr.bf16.mxu0 %v1465_v1  ;;  %v222_v18 = vmul.f32 %v1580_v16, %v1580_v16  ;;  %v1298_v21 = vld [vmem:[%s2252_s2 + $0x10] sm:$0xff]   ;;  %v223_v22 = vmul.f32 %v1590_v19, %v1590_v19  ;;  %v224_v23 = vmul.f32 %v1595_v20, %v1595_v20  ;;  %v1612_v25 = vld [vmem:[%s2254_s4 + $0x58] sm:$0xff]  ;;  %v1622_v28 = vld [vmem:[%s2254_s4 + $0x60] sm:$0xff] }
  0x14   :  { %v1607_v24 = vld [vmem:[%s2254_s4 + $0x50] sm:$0xff]  ;;  %v226_v27 = vmul.f32 %v1612_v25, %v1612_v25  ;;  %v1627_v29 = vld [vmem:[%s2254_s4 + $0x68] sm:$0xff]  ;;  %v1299_v30 = vld [vmem:[%s2252_s2 + $0x18] sm:$0xff]   ;;  %v227_v31 = vmul.f32 %v1622_v28, %v1622_v28 }
  0x15   :  { %v225_v26 = vmul.f32 %v1607_v24, %v1607_v24  ;;  %v228_v32 = vmul.f32 %v1627_v29, %v1627_v29  ;;  %v1639_v33 = vld [vmem:[%s2254_s4 + $0x70] sm:$0xff]  ;;  %v1644_v34 = vld [vmem:[%s2254_s4 + $0x78] sm:$0xff]  ;;  %v1300_v37 = vld [vmem:[%s2252_s2 + $0x20] sm:$0xff]  }
  0x16   :  { %233 = vadd.xlane.f32.xlu0 %v216_v8  ;;  %v229_v35 = vmul.f32 %v1639_v33, %v1639_v33  ;;  %v230_v36 = vmul.f32 %v1644_v34, %v1644_v34  ;;  %v1301_v38 = vld [vmem:[%s2252_s2 + $0x28] sm:$0xff]   ;;  %v1302_v39 = vld [vmem:[%s2252_s2 + $0x30] sm:$0xff]   ;;  %v1303_v40 = vld [vmem:[%s2252_s2 + $0x38] sm:$0xff]  }
  0x17   :  { %237 = vadd.xlane.f32.xlu1 %v218_v9  ;;  %v1670_v41 = vld [vmem:[%s2250_s0] sm:$0xf]  ;;  %s1143_s0 = sld [smem:[#allocation2 + $0x2]] }
  0x1a   :  { %1222 = vmatpush3.bf16.xpose.msra.mxu0 %v1297_v12  ;;  %239 = vadd.xlane.f32.xlu0 %v219_v13 }
  0x1b   :  { %1223 = vmatprep.subr.bf16.mxu0 %v1465_v1  ;;  %241 = vadd.xlane.f32.xlu1 %v220_v14 }
  0x1e   :  { %243 = vadd.xlane.f32.xlu0 %v221_v17 }
  0x1f   :  { %245 = vadd.xlane.f32.xlu1 %v222_v18 }
  0x22   :  { %1224 = vmatpush3.bf16.xpose.msra.mxu0 %v1298_v21  ;;  %247 = vadd.xlane.f32.xlu0 %v223_v22 }
  0x23   :  { %1225 = vmatprep.subr.bf16.mxu0 %v1465_v1  ;;  %249 = vadd.xlane.f32.xlu1 %v224_v23 }
  0x26   :  { %251 = vadd.xlane.f32.xlu0 %v225_v26 }
  0x27   :  { %253 = vadd.xlane.f32.xlu1 %v226_v27 }
  0x2a   :  { %1226 = vmatpush3.bf16.xpose.msra.mxu0 %v1299_v30  ;;  %255 = vadd.xlane.f32.xlu0 %v227_v31 }
  0x2b   :  { %1227 = vmatprep.subr.bf16.mxu0 %v1465_v1  ;;  %257 = vadd.xlane.f32.xlu1 %v228_v32 }
  0x2e   :  { %259 = vadd.xlane.f32.xlu0 %v229_v35 }
  0x2f   :  { %261 = vadd.xlane.f32.xlu1 %v230_v36 }
  0x32   :  { %1228 = vmatpush3.bf16.xpose.msra.mxu0 %v1300_v37 }
  0x33   :  { %1229 = vmatprep.subr.bf16.mxu0 %v1465_v1 }
  0x3a   :  { %1230 = vmatpush3.bf16.xpose.msra.mxu0 %v1301_v38 }
  0x3b   :  { %1231 = vmatprep.subr.bf16.mxu0 %v1465_v1 }
  0x42   :  { %1232 = vmatpush3.bf16.xpose.msra.mxu0 %v1302_v39 }
  0x43   :  { %1233 = vmatprep.subr.bf16.mxu0 %v1465_v1 }
  0x4a   :  { %1234 = vmatpush3.bf16.xpose.msra.mxu0 %v1303_v40 }
  0x4b   :  { %1259 = vmatprep.subr.bf16.mxu0 %v1465_v1 }
  0x51   :  { %1236 = vmatmul.mubr.bf16.vlgmr.msra.gmra.mrb[0].mxu0 %v1670_v41 }
  0x52   :  { %1275 = vmatprep.mubr.msk.bf16.mxu0 %vm1466_vm0, %v1465_v1 }
  0x9f   :  { %v232_v42 = vpop.xlane.xlu0 %231 }
  0xa0   :  { %v263_v43 = vmax.f32 %v232_v42, 1e-12  ;;  %v236_v44 = vpop.xlane.xlu1 %235 }
  0xa1   :  { %v265_v48 = vmax.f32 %v236_v44, 1e-12 }
  0xa2   :  { %1304 = vrsqrt.f32 %v263_v43 }
  0xa3   :  { %v234_v45 = vpop.xlane.xlu0 %233 }
  0xa4   :  { %v264_v46 = vmax.f32 %v234_v45, 1e-12  ;;  %v238_v47 = vpop.xlane.xlu1 %237 }
  0xa5   :  { %v266_v49 = vmax.f32 %v238_v47, 1e-12 }
  0xa6   :  { %1306 = vrsqrt.f32 %v264_v46 }
  0xa7   :  { %v240_v50 = vpop.xlane.xlu0 %239  ;;  %1308 = vrsqrt.f32 %v265_v48 }
  0xa8   :  { %v242_v51 = vpop.xlane.xlu1 %241  ;;  %1310 = vrsqrt.f32 %v266_v49  ;;  %v267_v52 = vmax.f32 %v240_v50, 1e-12 }
  0xa9   :  { %v268_v53 = vmax.f32 %v242_v51, 1e-12 }
  0xaa   :  { %1312 = vrsqrt.f32 %v267_v52 }
  0xab   :  { %1314 = vrsqrt.f32 %v268_v53  ;;  %v244_v56 = vpop.xlane.xlu0 %243 }
  0xac   :  { %v1305_v54 = vpop.eup %1304  ;;  %v246_v59 = vpop.xlane.xlu1 %245  ;;  %v269_v62 = vmax.f32 %v244_v56, 1e-12  ;;  %v1154_v56 = vld [vmem:[%s2252_s2] sm:$0xff]  }
  0xad   :  { %v295_v57 = vmul.f32 %v1305_v54, %v1520_v0  ;;  %v270_v2 = vmax.f32 %v246_v59, 1e-12 }
  0xae   :  { %1316 = vrsqrt.f32 %v269_v62  ;;  %v1721_v62 = vunpack.c.h.bf16 %v1154_v56 }
  0xaf   :  { %1318 = vrsqrt.f32 %v270_v2  ;;  %v248_v0 = vpop.xlane.xlu0 %247 }
  0xb0   :  { %v1307_v55 = vpop.eup %1306  ;;  %v250_v8 = vpop.xlane.xlu1 %249  ;;  %v271_v13 = vmax.f32 %v248_v0, 1e-12  ;;  %v1735_v0 = vld [vmem:[%s2253_s3 + $0x8] sm:$0xff] }
  0xb1   :  { %v296_v58 = vmul.f32 %v1307_v55, %v1536_v5  ;;  %v1309_v60 = vpop.eup %1308  ;;  %v272_v14 = vmax.f32 %v250_v8, 1e-12  ;;  %v45_v55 = vlaneseq  ;;  %v1739_v8 = vunpack.c.l.bf16 %v1154_v56 }
  0xb2   :  { %v1311_v63 = vpop.eup %1310  ;;  %v297_v3 = vmul.f32 %v1309_v60, %v1531_v4  ;;  %1320 = vrsqrt.f32 %v271_v13 }
  0xb3   :  { %v311_v61 = vpack.c.bf16 %v296_v58, %v295_v57  ;;  %v298_v6 = vmul.f32 %v1311_v63, %v1544_v7  ;;  %1322 = vrsqrt.f32 %v272_v14  ;;  %v252_v4 = vpop.xlane.xlu0 %251  ;;  %v1467_v57 = vmov -1e+30  }
  0xb4   :  { %v1313_v5 = vpop.eup %1312  ;;  %v254_v22 = vpop.xlane.xlu1 %253  ;;  %v273_v26 = vmax.f32 %v252_v4, 1e-12 }
  0xb5   :  { %1240 = vmatpush3.bf16.xpose.msra.mxu1 %v311_v61  ;;  %1260 = vmatpush3.bf16.xpose.msra.mxu0 %v311_v61  ;;  %v1315_v9 = vpop.eup %1314  ;;  %v312_v12 = vpack.c.bf16 %v298_v6, %v297_v3  ;;  %v299_v17 = vmul.f32 %v1313_v5, %v1558_v10  ;;  %v274_v27 = vmax.f32 %v254_v22, 1e-12  ;;  %v618_v6 = vmul.f32 %v1721_v62, %v1721_v62  ;;  %v1186_v22 = vld [vmem:[%s2252_s2 + $0x10] sm:$0xff]  }
  0xb6   :  { %1241 = vmatprep.subr.bf16.mxu1 %v1465_v1  ;;  %1261 = vmatprep.subr.bf16.mxu0 %v1465_v1  ;;  %v300_v18 = vmul.f32 %v1315_v9, %v1563_v11  ;;  %1324 = vrsqrt.f32 %v273_v26  ;;  %v778_v5 = vmul.f32 %v1735_v0, %v1735_v0  ;;  %v1185_v9 = vld [vmem:[%s2252_s2 + $0x8] sm:$0xff]   ;;  %v1771_v26 = vunpack.c.l.bf16 %v1186_v22 }
  0xb7   :  { %1326 = vrsqrt.f32 %v274_v27  ;;  %v256_v11 = vpop.xlane.xlu0 %255  ;;  %v1746_v13 = vunpack.c.l.bf16 %v1185_v9  ;;  %v1757_v4 = vunpack.c.h.bf16 %v1185_v9 }
  0xb8   :  { %v1317_v7 = vpop.eup %1316  ;;  %v313_v21 = vpack.c.bf16 %v300_v18, %v299_v17  ;;  %v258_v35 = vpop.xlane.xlu1 %257  ;;  %v275_v37 = vmax.f32 %v256_v11, 1e-12  ;;  %v1753_v17 = vld [vmem:[%s2253_s3 + $0x10] sm:$0xff]  ;;  %v621_v27 = vmul.f32 %v1771_v26, %v1771_v26 }
  0xb9   :  { %v1319_v23 = vpop.eup %1318  ;;  %v301_v30 = vmul.f32 %v1317_v7, %v1575_v15  ;;  %v276_v38 = vmax.f32 %v258_v35, 1e-12  ;;  %v619_v14 = vmul.f32 %v1746_v13, %v1746_v13  ;;  %v779_v18 = vmul.f32 %v1753_v17, %v1753_v17 }
  0xba   :  { %v302_v10 = vmul.f32 %v1319_v23, %v1580_v16  ;;  %1328 = vrsqrt.f32 %v275_v37  ;;  %v620_v7 = vmul.f32 %v1757_v4, %v1757_v4 }
  0xbb   :  { %1330 = vrsqrt.f32 %v276_v38  ;;  %v260_v16 = vpop.xlane.xlu0 %259 }
  0xbc   :  { %v1321_v31 = vpop.eup %1320  ;;  %v314_v32 = vpack.c.bf16 %v302_v10, %v301_v30  ;;  %v262_v43 = vpop.xlane.xlu1 %261  ;;  %v277_v45 = vmax.f32 %v260_v16, 1e-12  ;;  %v1468_v30 = vmov 0  }
  0xbd   :  { %1242 = vmatpush3.bf16.xpose.msra.mxu1 %v312_v12  ;;  %1262 = vmatpush3.bf16.xpose.msra.mxu0 %v312_v12  ;;  %v1323_v36 = vpop.eup %1322  ;;  %v303_v39 = vmul.f32 %v1321_v31, %v1590_v19  ;;  %v278_v46 = vmax.f32 %v262_v43, 1e-12  ;;  %v617_v12 = vmul.f32 %v1739_v8, %v1739_v8 }
  0xbe   :  { %1243 = vmatprep.subr.bf16.mxu1 %v1465_v1  ;;  %1263 = vmatprep.subr.bf16.mxu0 %v1465_v1  ;;  %v304_v15 = vmul.f32 %v1323_v36, %v1595_v20  ;;  %1332 = vrsqrt.f32 %v277_v45 }
  0xbf   :  { %1334 = vrsqrt.f32 %v278_v46  ;;  %1294 = vset.pattern.permute.xlu1 %v1468_v30  ;;  %1295 = vset.pattern.permute.xlu0 %v1468_v30 }
  0xc0   :  { %v1325_v40 = vpop.eup %1324  ;;  %v315_v42 = vpack.c.bf16 %v304_v15, %v303_v39 }
  0xc1   :  { %v1327_v44 = vpop.eup %1326  ;;  %v305_v47 = vmul.f32 %v1325_v40, %v1607_v24 }
  0xc2   :  { %v306_v19 = vmul.f32 %v1327_v44, %v1612_v25 }
  0xc4   :  { %v1329_v20 = vpop.eup %1328  ;;  %v316_v48 = vpack.c.bf16 %v306_v19, %v305_v47  ;;  %v1782_v47 = vld [vmem:[%s2253_s3 + $0x20] sm:$0xff] }
  0xc5   :  { %1244 = vmatpush3.bf16.xpose.msra.mxu1 %v313_v21  ;;  %1264 = vmatpush3.bf16.xpose.msra.mxu0 %v313_v21  ;;  %v1331_v49 = vpop.eup %1330  ;;  %v307_v50 = vmul.f32 %v1329_v20, %v1622_v28  ;;  %v1764_v21 = vld [vmem:[%s2253_s3 + $0x18] sm:$0xff] }
  0xc6   :  { %1245 = vmatprep.subr.bf16.mxu1 %v1465_v1  ;;  %1265 = vmatprep.subr.bf16.mxu0 %v1465_v1  ;;  %v308_v51 = vmul.f32 %v1331_v49, %v1627_v29  ;;  %v1708_v29 = vld [vmem:[%s2251_s1] sm:$0xf]  ;;  %v780_v23 = vmul.f32 %v1764_v21, %v1764_v21 }
  0xc8   :  { %v1333_v24 = vpop.eup %1332  ;;  %v317_v25 = vpack.c.bf16 %v308_v51, %v307_v50 }
  0xc9   :  { %v1335_v52 = vpop.eup %1334  ;;  %v309_v53 = vmul.f32 %v1333_v24, %v1639_v33  ;;  %v1713_v33 = vand.u32 127, %v45_v55 }
  0xca   :  { %v310_v54 = vmul.f32 %v1335_v52, %v1644_v34  ;;  %v168_v34 = vstv %s42_s13  ;;  %s1142_s13 = sld [smem:[#allocation2 + $0x1]] }
  0xcb   :  { %vm60_vm1 = vcmp.lt.s32.totalorder %v1713_v33, 8 }
  0xcc   :  { %v318_v28 = vpack.c.bf16 %v310_v54, %v309_v53  ;;  %v1719_v58 = vsel %vm60_vm1, 0.0, %v1467_v57  ;;  %v781_v53 = vmul.f32 %v1782_v47, %v1782_v47  ;;  %v1795_v54 = vunpack.c.h.bf16 %v1186_v22 }
  0xcd   :  { %1246 = vmatpush3.bf16.xpose.msra.mxu1 %v314_v32  ;;  %1266 = vmatpush3.bf16.xpose.msra.mxu0 %v314_v32 }
  0xce   :  { %1247 = vmatprep.subr.bf16.mxu1 %v1465_v1  ;;  %1267 = vmatprep.subr.bf16.mxu0 %v1465_v1 }
  0xd5   :  { %1248 = vmatpush3.bf16.xpose.msra.mxu1 %v315_v42  ;;  %1268 = vmatpush3.bf16.xpose.msra.mxu0 %v315_v42 }
  0xd6   :  { %1249 = vmatprep.subr.bf16.mxu1 %v1465_v1  ;;  %1269 = vmatprep.subr.bf16.mxu0 %v1465_v1 }
  0xdd   :  { %1250 = vmatpush3.bf16.xpose.msra.mxu1 %v316_v48  ;;  %1270 = vmatpush3.bf16.xpose.msra.mxu0 %v316_v48 }
  0xde   :  { %1251 = vmatprep.subr.bf16.mxu1 %v1465_v1  ;;  %1271 = vmatprep.subr.bf16.mxu0 %v1465_v1 }
  0xe5   :  { %1252 = vmatpush3.bf16.xpose.msra.mxu1 %v317_v25  ;;  %1272 = vmatpush3.bf16.xpose.msra.mxu0 %v317_v25 }
  0xe6   :  { %1253 = vmatprep.subr.bf16.mxu1 %v1465_v1  ;;  %1273 = vmatprep.subr.bf16.mxu0 %v1465_v1 }
  0xed   :  { %1254 = vmatpush3.bf16.xpose.msra.mxu1 %v318_v28  ;;  %1274 = vmatpush3.bf16.xpose.msra.mxu0 %v318_v28 }
  0xf4   :  { %1256 = vmatmul.mubr.bf16.vlgmr.msra.gmra.mrb[0].mxu1 %v1708_v29  ;;  %1276 = vmatmul.mubr.bf16.vlgmr.msra.gmra.mrb[4].mxu0 %v1670_v41 }
 0x124   :  { %v162_v59 = vpop.f32.mrb[0].mxu0 }
 0x125   :  { %v169_v60 = vmul.f32 %v168_v34, %v162_v59  ;;  %v1237_v61 = vpop.f32.mrb[1].mxu0 }
 0x126   :  { %v165_v63 = vpop.f32.mrb[2].mxu0  ;;  %v1809_v61 = vld [vmem:[%s2252_s2 + $0x18] sm:$0xff]  }
 0x127   :  { %170 = vst [vmem:[%s2257_s7] sm:$0xff] %v169_v60  ;;  %v1727_v2 = vadd.f32 %v169_v60, %v1719_v58  ;;  %v1238_v3 = vpop.f32.mrb[3].mxu0  ;;  %v1804_v60 = vld [vmem:[%s2253_s3 + $0x28] sm:$0xff] }
 0x129   :  { %172 = vmax.xlane.f32.xlu0 %v1727_v2 }
 0x12d   :  { %635 = vadd.xlane.f32.xlu0 %v618_v6  ;;  %v782_v6 = vmul.f32 %v1804_v60, %v1804_v60 }
 0x131   :  { %795 = vadd.xlane.f32.xlu0 %v778_v5  ;;  %v1814_v5 = vunpack.c.l.bf16 %v1809_v61 }
 0x133   :  { %v623_v22 = vmul.f32 %v1814_v5, %v1814_v5 }
 0x135   :  { %633 = vadd.xlane.f32.xlu0 %v617_v12 }
 0x139   :  { %637 = vadd.xlane.f32.xlu0 %v619_v14 }
 0x13d   :  { %797 = vadd.xlane.f32.xlu0 %v779_v18 }
 0x141   :  { %639 = vadd.xlane.f32.xlu0 %v620_v7 }
 0x145   :  { %799 = vadd.xlane.f32.xlu0 %v780_v23 }
 0x149   :  { %641 = vadd.xlane.f32.xlu0 %v621_v27  ;;  %v1821_v27 = vld [vmem:[%s2253_s3 + $0x30] sm:$0xff] }
 0x1b6   :  { %v1775_v10 = vpop.xlane.xlu0 %172 }
 0x1ba   :  { %v636_v11 = vpop.xlane.xlu0 %635 }
 0x1bb   :  { %1336 = vrsqrt.f32 %v636_v11  ;;  %vm674_vm2 = vcmp.eq.f32.partialorder %v636_v11, inf  ;;  %v677_v15 = vand.u32 2147483648, %v636_v11  ;;  %vm676_vm3 = vcmp.eq.f32.partialorder %v636_v11, 0.0 }
 0x1be   :  { %v796_v31 = vpop.xlane.xlu0 %795 }
 0x1bf   :  { %1338 = vrsqrt.f32 %v796_v31  ;;  %vm834_vm4 = vcmp.eq.f32.partialorder %v796_v31, inf  ;;  %v837_v20 = vand.u32 2147483648, %v796_v31  ;;  %vm836_vm5 = vcmp.eq.f32.partialorder %v796_v31, 0.0 }
 0x1c2   :  { %v1777_v32 = vpop.xlane.xlu0 %633 }
 0x1c5   :  { %v1337_v35 = vpop.eup %1336 }
 0x1c6   :  { %v638_v36 = vpop.xlane.xlu0 %637  ;;  %v673_v39 = vmul.f32 %v1337_v35, %v636_v11 }
 0x1c7   :  { %v353_v37 = vpop.f32.mrb[0].mxu1  ;;  %v423_v38 = vpop.f32.mrb[4].mxu0  ;;  %1340 = vrsqrt.f32 %v638_v36  ;;  %vm681_vm6 = vcmp.eq.f32.partialorder %v638_v36, inf  ;;  %v684_v9 = vand.u32 2147483648, %v638_v36  ;;  %vm683_vm7 = vcmp.eq.f32.partialorder %v638_v36, 0.0 }
 0x1c8   :  { %v359_v16 = vmul.f32 10.0, %v353_v37  ;;  %v429_v40 = vmul.f32 10.0, %v423_v38  ;;  %v1257_v42 = vpop.f32.mrb[1].mxu1  ;;  %v1277_v43 = vpop.f32.mrb[5].mxu0  ;;  %v675_v19 = vsel %vm674_vm2, %v636_v11, %v673_v39  ;;  %v783_v38 = vmul.f32 %v1821_v27, %v1821_v27 }
 0x1c9   :  { %v1339_v44 = vpop.eup %1338  ;;  %v356_v45 = vpop.f32.mrb[2].mxu1  ;;  %v678_v52 = vsel %vm676_vm3, %v677_v15, %v675_v19  ;;  %v1833_v15 = vld [vmem:[%s2253_s3 + $0x38] sm:$0xff] }
 0x1ca   :  { %v426_v46 = vpop.f32.mrb[6].mxu0  ;;  %v1786_v48 = vadd.f32 %v359_v16, %v1719_v58  ;;  %v1789_v49 = vadd.f32 %v429_v40, %v1719_v58  ;;  %v1258_v50 = vpop.f32.mrb[3].mxu1  ;;  %v833_v24 = vmul.f32 %v1339_v44, %v796_v31  ;;  %v622_v58 = vmul.f32 %v1795_v54, %v1795_v54 }
 0x1cb   :  { %v1278_v51 = vpop.f32.mrb[7].mxu0  ;;  %v798_v25 = vpop.xlane.xlu0 %797  ;;  %v784_v44 = vmul.f32 %v1833_v15, %v1833_v15  ;;  %v1840_v46 = vld [vmem:[%s2253_s3 + $0x40] sm:$0xff] }
 0x1cc   :  { %361 = vmax.xlane.f32.xlu1 %v1786_v48  ;;  %431 = vmax.xlane.f32.xlu0 %v1789_v49  ;;  %v835_v28 = vsel %vm834_vm4, %v796_v31, %v833_v24  ;;  %1342 = vrsqrt.f32 %v798_v25  ;;  %vm841_vm8 = vcmp.eq.f32.partialorder %v798_v25, inf  ;;  %v844_v18 = vand.u32 2147483648, %v798_v25  ;;  %v55_v31 = vld [vmem:[%s2255_s5] sm:$0xff]  ;;  %v1849_v24 = vld [vmem:[%s2253_s3 + $0x48] sm:$0xff] }
 0x1cd   :  { %v838_v34 = vsel %vm836_vm5, %v837_v20, %v835_v28  ;;  %vm843_vm9 = vcmp.eq.f32.partialorder %v798_v25, 0.0  ;;  %v785_v51 = vmul.f32 %v1840_v46, %v1840_v46  ;;  %v1863_v28 = vld [vmem:[%s2253_s3 + $0x58] sm:$0xff] }
 0x1ce   :  { %v1797_v56 = vmul.f32 %v838_v34, %v678_v52  ;;  %v1856_v52 = vld [vmem:[%s2253_s3 + $0x50] sm:$0xff]  ;;  %v788_v34 = vmul.f32 %v1863_v28, %v1863_v28 }
 0x1cf   :  { %v640_v57 = vpop.xlane.xlu0 %639 }
 0x1d0   :  { %801 = vadd.xlane.f32.xlu0 %v781_v53  ;;  %1344 = vrsqrt.f32 %v640_v57  ;;  %vm688_vm10 = vcmp.eq.f32.partialorder %v640_v57, inf  ;;  %v691_v39 = vand.u32 2147483648, %v640_v57  ;;  %vm690_vm11 = vcmp.eq.f32.partialorder %v640_v57, 0.0 }
 0x1d1   :  { %v1341_v59 = vpop.eup %1340  ;;  %v787_v53 = vmul.f32 %v1856_v52, %v1856_v52 }
 0x1d2   :  { %v680_v63 = vmul.f32 %v1341_v59, %v638_v36  ;;  %v1877_v59 = vld [vmem:[%s2253_s3 + $0x68] sm:$0xff] }
 0x1d3   :  { %v800_v3 = vpop.xlane.xlu0 %799 }
 0x1d4   :  { %643 = vadd.xlane.f32.xlu0 %v622_v58  ;;  %1346 = vrsqrt.f32 %v800_v3  ;;  %v682_v12 = vsel %vm681_vm6, %v638_v36, %v680_v63  ;;  %vm848_vm12 = vcmp.eq.f32.partialorder %v800_v3, inf  ;;  %v851_v42 = vand.u32 2147483648, %v800_v3 }
 0x1d5   :  { %v685_v23 = vsel %vm683_vm7, %v684_v9, %v682_v12  ;;  %vm850_vm13 = vcmp.eq.f32.partialorder %v800_v3, 0.0  ;;  %v790_v63 = vmul.f32 %v1877_v59, %v1877_v59  ;;  %v1892_v12 = vunpack.c.l.bf16 %v1670_v41 }
 0x1d6   :  { %v1343_v14 = vpop.eup %1342  ;;  %vm667_vm7 = vcmp.eq.f32.partialorder %v1777_v32, inf }
 0x1d7   :  { %v840_v7 = vmul.f32 %v1343_v14, %v798_v25 }
 0x1d8   :  { %803 = vadd.xlane.f32.xlu0 %v782_v6  ;;  %v601_v6 = vld [vmem:[%s2253_s3] sm:$0xff] }
 0x1d9   :  { %v842_v30 = vsel %vm841_vm8, %v798_v25, %v840_v7  ;;  %v786_v25 = vmul.f32 %v1849_v24, %v1849_v24  ;;  %v777_v14 = vmul.f32 %v601_v6, %v601_v6  ;;  %v1188_v7 = vld [vmem:[%s2252_s2 + $0x20] sm:$0xff]  }
 0x1da   :  { %v1345_v11 = vpop.eup %1344  ;;  %v845_v35 = vsel %vm843_vm9, %v844_v18, %v842_v30  ;;  %v1168_v18 = vunpack.c.h.bf16 %v1809_v61  ;;  %v1903_v30 = vld [vmem:[%s2253_s3 + $0x78] sm:$0xff]  ;;  %v1171_v41 = vunpack.c.l.bf16 %v1188_v7  ;;  %vm669_vm9 = vcmp.eq.f32.partialorder %v1777_v32, 0.0 }
 0x1db   :  { %v687_v36 = vmul.f32 %v1345_v11, %v640_v57  ;;  %v1826_v37 = vmul.f32 %v845_v35, %v685_v23  ;;  %v792_v61 = vmul.f32 %v1903_v30, %v1903_v30  ;;  %v174_v11 = vsub.f32 %v1727_v2, %v1775_v10 }
 0x1dc   :  { %645 = vadd.xlane.f32.xlu0 %v623_v22  ;;  %v471_v22 = vmul.f32 %v1892_v12, %v1892_v12  ;;  %v624_v23 = vmul.f32 %v1168_v18, %v1168_v18  ;;  %v1172_v35 = vunpack.c.h.bf16 %v1188_v7 }
 0x1dd   :  { %57 = vperm.xlu1 %1294, %v55_v31   ;;  %v689_v16 = vsel %vm688_vm10, %v640_v57, %v687_v36  ;;  %v1870_v57 = vld [vmem:[%s2253_s3 + $0x60] sm:$0xff]  ;;  %v625_v31 = vmul.f32 %v1171_v41, %v1171_v41  ;;  %v1189_v36 = vld [vmem:[%s2252_s2 + $0x28] sm:$0xff]  }
 0x1de   :  { %v1347_v40 = vpop.eup %1346  ;;  %v692_v45 = vsel %vm690_vm11, %v691_v39, %v689_v16  ;;  %v789_v58 = vmul.f32 %v1870_v57, %v1870_v57  ;;  %v175_v39 = vmul.f32 1.442695, %v174_v11  ;;  %v626_v16 = vmul.f32 %v1172_v35, %v1172_v35 }
 0x1df   :  { %v847_v43 = vmul.f32 %v1347_v40, %v800_v3  ;;  %v1175_v40 = vunpack.c.l.bf16 %v1189_v36  ;;  %v946_v7 = vmul.f32 %v1172_v35, %v1849_v24 }
 0x1e0   :  { %805 = vadd.xlane.f32.xlu0 %v783_v38  ;;  %v937_v38 = vmul.f32 %v1739_v8, %v601_v6  ;;  %1348 = vpow2.f32 %v175_v39  ;;  %v942_v8 = vmul.f32 %v1795_v54, %v1804_v60 }
 0x1e1   :  { %v849_v19 = vsel %vm848_vm12, %v800_v3, %v847_v43  ;;  %v1884_v3 = vld [vmem:[%s2253_s3 + $0x70] sm:$0xff]  ;;  %v627_v43 = vmul.f32 %v1175_v40, %v1175_v40  ;;  %v947_v6 = vmul.f32 %v1175_v40, %v1856_v52  ;;  %v941_v52 = vmul.f32 %v1771_v26, %v1782_v47 }
 0x1e2   :  { %v852_v20 = vsel %vm850_vm13, %v851_v42, %v849_v19  ;;  %v791_v9 = vmul.f32 %v1884_v3, %v1884_v3  ;;  %v940_v42 = vmul.f32 %v1757_v4, %v1764_v21  ;;  %v1191_v4 = vld [vmem:[%s2252_s2 + $0x38] sm:$0xff]  }
 0x1e3   :  { %v1842_v50 = vmul.f32 %v852_v20, %v692_v45  ;;  %v1190_v45 = vld [vmem:[%s2252_s2 + $0x30] sm:$0xff]   ;;  %v1183_v60 = vunpack.c.l.bf16 %v1191_v4 }
 0x1e4   :  { %807 = vadd.xlane.f32.xlu0 %v784_v44  ;;  %v1176_v44 = vunpack.c.h.bf16 %v1189_v36  ;;  %v1179_v20 = vunpack.c.l.bf16 %v1190_v45 }
 0x1e6   :  { %v628_v19 = vmul.f32 %v1176_v44, %v1176_v44 }
 0x1e8   :  { %809 = vadd.xlane.f32.xlu0 %v785_v51  ;;  %v629_v51 = vmul.f32 %v1179_v20, %v1179_v20 }
 0x1ea   :  { %v1349_v21 = vpop.eup %1348 }
 0x1ec   :  { %811 = vadd.xlane.f32.xlu0 %v786_v25  ;;  %v1920_v25 = vunpack.c.h.bf16 %v1190_v45 }
 0x1ee   :  { %v630_v54 = vmul.f32 %v1920_v25, %v1920_v25 }
 0x1f0   :  { %813 = vadd.xlane.f32.xlu0 %v787_v53  ;;  %v944_v53 = vmul.f32 %v1168_v18, %v1833_v15  ;;  %v949_v15 = vmul.f32 %v1179_v20, %v1870_v57  ;;  %v943_v57 = vmul.f32 %v1814_v5, %v1821_v27 }
 0x1f4   :  { %815 = vadd.xlane.f32.xlu0 %v788_v34  ;;  %v945_v34 = vmul.f32 %v1171_v41, %v1840_v46  ;;  %v939_v46 = vmul.f32 %v1746_v13, %v1753_v17 }
 0x1f8   :  { %817 = vadd.xlane.f32.xlu0 %v789_v58  ;;  %v459_v58 = vunpack.c.l.bf16 %v1708_v29  ;;  %v938_v29 = vmul.f32 %v1721_v62, %v1735_v0  ;;  %v1946_v62 = vpop.xlane.xlu0 %641 }
 0x1f9   :  { %vm695_vm11 = vcmp.eq.f32.partialorder %v1946_v62, inf }
 0x1fc   :  { %819 = vadd.xlane.f32.xlu0 %v790_v63  ;;  %v631_v63 = vmul.f32 %v1183_v60, %v1183_v60 }
 0x200   :  { %821 = vadd.xlane.f32.xlu0 %v791_v9  ;;  %v461_v9 = vmul.f32 %v459_v58, %v459_v58 }
 0x201   :  { %793 = vadd.xlane.f32.xlu1 %v777_v14  ;;  %v1931_v14 = vunpack.c.h.bf16 %v1191_v4 }
 0x203   :  { %v632_v18 = vmul.f32 %v1931_v14, %v1931_v14 }
 0x204   :  { %472 = vadd.xlane.f32.xlu0 %v471_v22  ;;  %v948_v22 = vmul.f32 %v1176_v44, %v1863_v28 }
 0x205   :  { %647 = vadd.xlane.f32.xlu1 %v624_v23  ;;  %v951_v23 = vmul.f32 %v1183_v60, %v1884_v3  ;;  %v950_v3 = vmul.f32 %v1920_v25, %v1877_v59 }
 0x208   :  { %823 = vadd.xlane.f32.xlu0 %v792_v61  ;;  %v481_v61 = vmul.f32 %v1892_v12, %v459_v58 }
 0x209   :  { %649 = vadd.xlane.f32.xlu1 %v625_v31 }
 0x20c   :  { %953 = vadd.xlane.f32.xlu0 %v937_v38 }
 0x20d   :  { %651 = vadd.xlane.f32.xlu1 %v626_v16 }
 0x210   :  { %959 = vadd.xlane.f32.xlu0 %v940_v42 }
 0x211   :  { %653 = vadd.xlane.f32.xlu1 %v627_v43 }
 0x214   :  { %963 = vadd.xlane.f32.xlu0 %v942_v8 }
 0x215   :  { %655 = vadd.xlane.f32.xlu1 %v628_v19 }
 0x218   :  { %177 = vadd.xlane.f32.xlu0 %v1349_v21 }
 0x219   :  { %657 = vadd.xlane.f32.xlu1 %v629_v51 }
 0x21c   :  { %967 = vadd.xlane.f32.xlu0 %v944_v53 }
 0x21d   :  { %659 = vadd.xlane.f32.xlu1 %v630_v54 }
 0x220   :  { %969 = vadd.xlane.f32.xlu0 %v945_v34 }
 0x221   :  { %661 = vadd.xlane.f32.xlu1 %v631_v63  ;;  %v952_v63 = vmul.f32 %v1931_v14, %v1903_v30 }
 0x224   :  { %973 = vadd.xlane.f32.xlu0 %v947_v6 }
 0x225   :  { %462 = vadd.xlane.f32.xlu1 %v461_v9 }
 0x228   :  { %977 = vadd.xlane.f32.xlu0 %v949_v15 }
 0x229   :  { %663 = vadd.xlane.f32.xlu1 %v632_v18 }
 0x22d   :  { %955 = vadd.xlane.f32.xlu1 %v938_v29 }
 0x231   :  { %957 = vadd.xlane.f32.xlu1 %v939_v46 }
 0x235   :  { %961 = vadd.xlane.f32.xlu1 %v941_v52 }
 0x239   :  { %965 = vadd.xlane.f32.xlu1 %v943_v57 }
 0x23d   :  { %971 = vadd.xlane.f32.xlu1 %v946_v7 }
 0x241   :  { %975 = vadd.xlane.f32.xlu1 %v948_v22 }
 0x259   :  { %v1948_v0 = vpop.xlane.xlu1 %361  ;;  %v1950_v13 = vpop.xlane.xlu0 %431 }
 0x25a   :  { %v363_v17 = vsub.f32 %v1786_v48, %v1948_v0  ;;  %v433_v26 = vsub.f32 %v1789_v49, %v1950_v13 }
 0x25c   :  { %v364_v47 = vmul.f32 1.442695, %v363_v17  ;;  %v434_v5 = vmul.f32 1.442695, %v433_v26 }
 0x25d   :  { %v58_v27 = vpop.permute.xlu1 %57  ;;  %v1956_v24 = vpop.xlane.xlu0 %801 }
 0x25e   :  { %1350 = vpow2.f32 %v364_v47  ;;  %vm59_vm14 = vcmp.eq.s32.totalorder %v1713_v33, %v58_v27  ;;  %vm855_vm12 = vcmp.eq.f32.partialorder %v1956_v24, inf  ;;  %vm857_vm13 = vcmp.eq.f32.partialorder %v1956_v24, 0.0 }
 0x25f   :  { %v182_v28 = vsel %vm59_vm14, %v1727_v2, 0.0  ;;  %1352 = vpow2.f32 %v434_v5  ;;  %v371_v59 = vsel %vm59_vm14, %v1786_v48, 0.0  ;;  %v441_v34 = vsel %vm59_vm14, %v1789_v49, 0.0 }
 0x260   :  { %183 = vadd.xlane.f32.xlu0 %v182_v28 }
 0x261   :  { %v644_v41 = vpop.xlane.xlu0 %643 }
 0x262   :  { %1354 = vrsqrt.f32 %v644_v41  ;;  %vm702_vm15 = vcmp.eq.f32.partialorder %v644_v41, inf  ;;  %v705_v16 = vand.u32 2147483648, %v644_v41  ;;  %vm704_vm0 = vcmp.eq.f32.partialorder %v644_v41, 0.0 }
 0x264   :  { %981 = vadd.xlane.f32.xlu0 %v951_v23 }
 0x265   :  { %v804_v11 = vpop.xlane.xlu0 %803 }
 0x266   :  { %1356 = vrsqrt.f32 %v804_v11  ;;  %vm862_vm1 = vcmp.eq.f32.partialorder %v804_v11, inf  ;;  %v865_v42 = vand.u32 2147483648, %v804_v11  ;;  %vm864_vm2 = vcmp.eq.f32.partialorder %v804_v11, 0.0 }
 0x268   :  { %v1351_v31 = vpop.eup %1350  ;;  %482 = vadd.xlane.f32.xlu0 %v481_v61 }
 0x269   :  { %366 = vadd.xlane.f32.xlu1 %v1351_v31  ;;  %v646_v35 = vpop.xlane.xlu0 %645  ;;  %v1353_v36 = vpop.eup %1352 }
 0x26a   :  { %1358 = vrsqrt.f32 %v646_v35  ;;  %vm709_vm3 = vcmp.eq.f32.partialorder %v646_v35, inf  ;;  %v712_v21 = vand.u32 2147483648, %v646_v35  ;;  %vm711_vm4 = vcmp.eq.f32.partialorder %v646_v35, 0.0 }
 0x26c   :  { %v1355_v38 = vpop.eup %1354 }
 0x26d   :  { %v701_v2 = vmul.f32 %v1355_v38, %v644_v41  ;;  %436 = vadd.xlane.f32.xlu1 %v1353_v36  ;;  %v806_v39 = vpop.xlane.xlu0 %805 }
 0x26e   :  { %1360 = vrsqrt.f32 %v806_v39  ;;  %vm869_vm5 = vcmp.eq.f32.partialorder %v806_v39, inf  ;;  %v872_v60 = vand.u32 2147483648, %v806_v39  ;;  %vm871_vm6 = vcmp.eq.f32.partialorder %v806_v39, 0.0 }
 0x26f   :  { %v703_v40 = vsel %vm702_vm15, %v644_v41, %v701_v2  ;;  %1362 = vrsqrt.f32 %v1777_v32  ;;  %v670_v41 = vand.u32 2147483648, %v1777_v32 }
 0x270   :  { %v1357_v12 = vpop.eup %1356  ;;  %v706_v45 = vsel %vm704_vm0, %v705_v16, %v703_v40 }
 0x271   :  { %v861_v43 = vmul.f32 %v1357_v12, %v804_v11  ;;  %979 = vadd.xlane.f32.xlu1 %v950_v3  ;;  %v1966_v44 = vpop.xlane.xlu0 %807 }
 0x272   :  { %vm876_vm14 = vcmp.eq.f32.partialorder %v1966_v44, inf }
 0x273   :  { %v863_v8 = vsel %vm862_vm1, %v804_v11, %v861_v43 }
 0x274   :  { %v1359_v19 = vpop.eup %1358  ;;  %v866_v20 = vsel %vm864_vm2, %v865_v42, %v863_v8  ;;  %v858_v8 = vand.u32 2147483648, %v1956_v24  ;;  %vm878_vm2 = vcmp.eq.f32.partialorder %v1966_v44, 0.0 }
 0x275   :  { %v708_v51 = vmul.f32 %v1359_v19, %v646_v35  ;;  %372 = vadd.xlane.f32.xlu1 %v371_v59  ;;  %v1971_v25 = vpop.xlane.xlu0 %809  ;;  %v1973_v4 = vmul.f32 %v866_v20, %v706_v45 }
 0x276   :  { %vm883_vm0 = vcmp.eq.f32.partialorder %v1971_v25, inf }
 0x277   :  { %v710_v53 = vsel %vm709_vm3, %v646_v35, %v708_v51 }
 0x278   :  { %v1361_v54 = vpop.eup %1360  ;;  %v713_v6 = vsel %vm711_vm4, %v712_v21, %v710_v53  ;;  %v879_v21 = vand.u32 2147483648, %v1966_v44  ;;  %vm885_vm4 = vcmp.eq.f32.partialorder %v1971_v25, 0.0 }
 0x279   :  { %v868_v58 = vmul.f32 %v1361_v54, %v806_v39  ;;  %442 = vadd.xlane.f32.xlu1 %v441_v34  ;;  %v1978_v48 = vpop.xlane.xlu0 %811  ;;  %v1363_v22 = vpop.eup %1362 }
 0x27a   :  { %v666_v47 = vmul.f32 %v1363_v22, %v1777_v32 }
 0x27b   :  { %v870_v9 = vsel %vm869_vm5, %v806_v39, %v868_v58 }
 0x27c   :  { %v873_v15 = vsel %vm871_vm6, %v872_v60, %v870_v9  ;;  %v668_v31 = vsel %vm667_vm7, %v1777_v32, %v666_v47  ;;  %vm697_vm6 = vcmp.eq.f32.partialorder %v1946_v62, 0.0  ;;  %vm890_vm7 = vcmp.eq.f32.partialorder %v1978_v48, inf }
 0x27d   :  { %983 = vadd.xlane.f32.xlu1 %v952_v63  ;;  %v1982_v18 = vpop.xlane.xlu0 %813  ;;  %v1984_v29 = vmul.f32 %v873_v15, %v713_v6  ;;  %v671_v16 = vsel %vm669_vm9, %v670_v41, %v668_v31  ;;  %v886_v63 = vand.u32 2147483648, %v1971_v25  ;;  %vm892_vm9 = vcmp.eq.f32.partialorder %v1978_v48, 0.0 }
 0x281   :  { %v1986_v46 = vpop.xlane.xlu0 %815 }
 0x285   :  { %v1988_v52 = vpop.xlane.xlu0 %817 }
 0x289   :  { %v1990_v49 = vpop.xlane.xlu0 %819 }
 0x28d   :  { %v1994_v30 = vpop.xlane.xlu0 %821 }
 0x28e   :  { %v794_v57 = vpop.xlane.xlu1 %793 }
 0x28f   :  { %1364 = vrsqrt.f32 %v794_v57  ;;  %vm827_vm8 = vcmp.eq.f32.partialorder %v794_v57, inf  ;;  %v830_v61 = vand.u32 2147483648, %v794_v57  ;;  %vm829_vm10 = vcmp.eq.f32.partialorder %v794_v57, 0.0 }
 0x290   :  { %1366 = vrsqrt.f32 %v1946_v62 }
 0x291   :  { %1368 = vrsqrt.f32 %v1956_v24  ;;  %v2005_v17 = vpop.xlane.xlu0 %472 }
 0x292   :  { %v1996_v14 = vpop.xlane.xlu1 %647  ;;  %1370 = vrsqrt.f32 %v1966_v44 }
 0x293   :  { %1372 = vrsqrt.f32 %v1996_v14  ;;  %vm716_vm15 = vcmp.eq.f32.partialorder %v1996_v14, inf  ;;  %v719_v53 = vand.u32 2147483648, %v1996_v14  ;;  %vm718_vm3 = vcmp.eq.f32.partialorder %v1996_v14, 0.0 }
 0x294   :  { %1374 = vrsqrt.f32 %v1971_v25 }
 0x295   :  { %v2015_v36 = vpop.xlane.xlu0 %823 }
 0x296   :  { %v2002_v7 = vpop.xlane.xlu1 %649 }
 0x297   :  { %1376 = vrsqrt.f32 %v2002_v7  ;;  %vm723_vm1 = vcmp.eq.f32.partialorder %v2002_v7, inf  ;;  %v726_v6 = vand.u32 2147483648, %v2002_v7  ;;  %vm725_vm5 = vcmp.eq.f32.partialorder %v2002_v7, 0.0 }
 0x298   :  { %1378 = vrsqrt.f32 %v1978_v48 }
 0x299   :  { %v1365_v26 = vpop.eup %1364  ;;  %v2034_v51 = vpop.xlane.xlu0 %953 }
 0x29a   :  { %v826_v5 = vmul.f32 %v1365_v26, %v794_v57  ;;  %v2008_v27 = vpop.xlane.xlu1 %651  ;;  %v1367_v28 = vpop.eup %1366  ;;  %v1002_v26 = vmax.f32 %v1797_v56, 1e-07 }
 0x29b   :  { %v1369_v23 = vpop.eup %1368  ;;  %1380 = vrsqrt.f32 %v2008_v27  ;;  %v694_v12 = vmul.f32 %v1367_v28, %v1946_v62  ;;  %v698_v28 = vand.u32 2147483648, %v1946_v62 }
 0x29c   :  { %v1371_v11 = vpop.eup %1370  ;;  %v828_v35 = vsel %vm827_vm8, %v794_v57, %v826_v5  ;;  %v854_v45 = vmul.f32 %v1369_v23, %v1956_v24  ;;  %v1004_v23 = vmax.f32 %v1842_v50, 1e-07  ;;  %vm730_vm8 = vcmp.eq.f32.partialorder %v2008_v27, inf }
 0x29d   :  { %v1373_v2 = vpop.eup %1372  ;;  %v831_v40 = vsel %vm829_vm10, %v830_v61, %v828_v35  ;;  %v875_v32 = vmul.f32 %v1371_v11, %v1966_v44  ;;  %v960_v41 = vpop.xlane.xlu0 %959  ;;  %vm732_vm10 = vcmp.eq.f32.partialorder %v2008_v27, 0.0 }
 0x29e   :  { %v2017_v38 = vpop.xlane.xlu1 %653  ;;  %v1375_v39 = vpop.eup %1374  ;;  %v715_v42 = vmul.f32 %v1373_v2, %v1996_v14  ;;  %v985_v20 = vmul.f32 %v831_v40, %v671_v16  ;;  %v856_v58 = vsel %vm855_vm12, %v1956_v24, %v854_v45  ;;  %v1003_v2 = vmax.f32 %v1826_v37, 1e-07 }
 0x29f   :  { %v882_v19 = vmul.f32 %v1375_v39, %v1971_v25  ;;  %v877_v54 = vsel %vm876_vm14, %v1966_v44, %v875_v32  ;;  %v859_v56 = vsel %vm857_vm13, %v858_v8, %v856_v58  ;;  %v1006_v24 = vmax.f32 %v1973_v4, 1e-07 }
 0x2a0   :  { %v717_v60 = vsel %vm716_vm15, %v1996_v14, %v715_v42  ;;  %v1001_v14 = vmax.f32 %v985_v20, 1e-07  ;;  %v880_v5 = vsel %vm878_vm2, %v879_v21, %v877_v54  ;;  %v893_v16 = vand.u32 2147483648, %v1978_v48 }
 0x2a1   :  { %v1377_v3 = vpop.eup %1376  ;;  %v884_v15 = vsel %vm883_vm0, %v1971_v25, %v882_v19  ;;  %v720_v47 = vsel %vm718_vm3, %v719_v53, %v717_v60  ;;  %v733_v40 = vand.u32 2147483648, %v2008_v27  ;;  %v964_v4 = vpop.xlane.xlu0 %963  ;;  %v1007_v60 = vmax.f32 %v1984_v29, 1e-07 }
 0x2a2   :  { %v2025_v43 = vpop.xlane.xlu1 %655  ;;  %v722_v59 = vmul.f32 %v1377_v3, %v2002_v7  ;;  %v1379_v9 = vpop.eup %1378  ;;  %v887_v44 = vsel %vm885_vm4, %v886_v63, %v884_v15  ;;  %1382 = vrcp.f32 %v1001_v14  ;;  %v992_v50 = vmul.f32 %v880_v5, %v720_v47 }
 0x2a3   :  { %v889_v31 = vmul.f32 %v1379_v9, %v1978_v48  ;;  %1384 = vrcp.f32 %v1002_v26  ;;  %vm897_vm12 = vcmp.eq.f32.partialorder %v1982_v18, inf  ;;  %vm737_vm13 = vcmp.eq.f32.partialorder %v2017_v38, inf }
 0x2a4   :  { %v724_v57 = vsel %vm723_vm1, %v2002_v7, %v722_v59  ;;  %v696_v7 = vsel %vm695_vm11, %v1946_v62, %v694_v12  ;;  %1386 = vrcp.f32 %v1004_v23  ;;  %v1008_v42 = vmax.f32 %v992_v50, 1e-07 }
 0x2a5   :  { %v1381_v22 = vpop.eup %1380  ;;  %v727_v11 = vsel %vm725_vm5, %v726_v6, %v724_v57  ;;  %v699_v25 = vsel %vm697_vm6, %v698_v28, %v696_v7  ;;  %v891_v32 = vsel %vm890_vm7, %v1978_v48, %v889_v31  ;;  %1388 = vrcp.f32 %v1006_v24  ;;  %v2088_v21 = vpop.xlane.xlu0 %177 }
 0x2a6   :  { %v2044_v34 = vpop.xlane.xlu1 %657  ;;  %v729_v35 = vmul.f32 %v1381_v22, %v2008_v27  ;;  %v993_v3 = vmul.f32 %v887_v44, %v727_v11  ;;  %v989_v12 = vmul.f32 %v859_v56, %v699_v25  ;;  %1390 = vrcp.f32 %v1003_v2 }
 0x2a7   :  { %v894_v19 = vsel %vm892_vm9, %v893_v16, %v891_v32  ;;  %1392 = vrcp.f32 %v1008_v42  ;;  %vm187_vm11 = vcmask 7168   ;;  %vm899_vm14 = vcmp.eq.f32.partialorder %v1982_v18, 0.0 }
 0x2a8   :  { %v731_v37 = vsel %vm730_vm8, %v2008_v27, %v729_v35  ;;  %v1009_v62 = vmax.f32 %v993_v3, 1e-07  ;;  %v1005_v59 = vmax.f32 %v989_v12, 1e-07  ;;  %vm739_vm15 = vcmp.eq.f32.partialorder %v2017_v38, 0.0 }
 0x2a9   :  { %v734_v8 = vsel %vm732_vm10, %v733_v40, %v731_v37  ;;  %v968_v9 = vpop.xlane.xlu0 %967  ;;  %vm904_vm0 = vcmp.eq.f32.partialorder %v1986_v46, inf  ;;  %vm744_vm1 = vcmp.eq.f32.partialorder %v2025_v43, inf  ;;  %vm906_vm2 = vcmp.eq.f32.partialorder %v1986_v46, 0.0 }
 0x2aa   :  { %v2061_v61 = vpop.xlane.xlu1 %659  ;;  %1394 = vrcp.f32 %v1009_v62  ;;  %v994_v48 = vmul.f32 %v894_v19, %v734_v8  ;;  %vm911_vm3 = vcmp.eq.f32.partialorder %v1988_v52, inf  ;;  %vm746_vm4 = vcmp.eq.f32.partialorder %v2025_v43, 0.0 }
 0x2ab   :  { %1396 = vrcp.f32 %v1005_v59  ;;  %vm751_vm5 = vcmp.eq.f32.partialorder %v2044_v34, inf  ;;  %vm913_vm6 = vcmp.eq.f32.partialorder %v1988_v52, 0.0  ;;  %vm918_vm7 = vcmp.eq.f32.partialorder %v1990_v49, inf }
 0x2ac   :  { %v1383_v20 = vpop.eup %1382  ;;  %v1010_v15 = vmax.f32 %v994_v48, 1e-07  ;;  %1398 = vrcp.f32 %v1007_v60  ;;  %vm920_vm8 = vcmp.eq.f32.partialorder %v1990_v49, 0.0  ;;  %vm753_vm9 = vcmp.eq.f32.partialorder %v2044_v34, 0.0 }
 0x2ad   :  { %v1385_v54 = vpop.eup %1384  ;;  %v1018_v58 = vmul.f32 %v1383_v20, %v2034_v51  ;;  %v970_v51 = vpop.xlane.xlu0 %969  ;;  %vm925_vm10 = vcmp.eq.f32.partialorder %v1994_v30, inf }
 0x2ae   :  { %v2076_v39 = vpop.xlane.xlu1 %661  ;;  %v1387_v27 = vpop.eup %1386  ;;  %1400 = vrcp.f32 %v1010_v15 }
 0x2af   :  { %v1024_v63 = vmul.f32 %v1387_v27, %v960_v41  ;;  %v1389_v14 = vpop.eup %1388  ;;  %v1050_v26 = vsub.f32 1.0, %v1018_v58  ;;  %1402 = vrsqrt.f32 %v1982_v18 }
 0x2b0   :  { %v1391_v22 = vpop.eup %1390  ;;  %v1028_v7 = vmul.f32 %v1389_v14, %v964_v4  ;;  %1404 = vrsqrt.f32 %v2017_v38 }
 0x2b1   :  { %v1393_v5 = vpop.eup %1392  ;;  %v1053_v28 = vsub.f32 1.0, %v1024_v63  ;;  %v1082_v41 = vsel %vm187_vm11, %v1050_v26, 0.0  ;;  %1406 = vrsqrt.f32 %v1986_v46 }
 0x2b2   :  { %v2086_v45 = vpop.xlane.xlu1 %462  ;;  %v1032_v35 = vmul.f32 %v1393_v5, %v968_v9  ;;  %v1055_v3 = vsub.f32 1.0, %v1028_v7  ;;  %1408 = vrsqrt.f32 %v2025_v43 }
 0x2b3   :  { %v1069_v2 = vmul.f32 0.0, %v1053_v28  ;;  %1410 = vrsqrt.f32 %v1988_v52 }
 0x2b4   :  { %v1395_v29 = vpop.eup %1394  ;;  %v1057_v4 = vsub.f32 1.0, %v1032_v35  ;;  %v1071_v59 = vmul.f32 0.0, %v1055_v3  ;;  %1412 = vrsqrt.f32 %v2044_v34  ;;  %v900_v3 = vand.u32 2147483648, %v1982_v18 }
 0x2b5   :  { %v1397_v50 = vpop.eup %1396  ;;  %v1034_v12 = vmul.f32 %v1395_v29, %v970_v51  ;;  %v1087_v62 = vsel %vm187_vm11, %v1069_v2, 0.0  ;;  %1414 = vrsqrt.f32 %v1990_v49 }
 0x2b6   :  { %v2090_v53 = vpop.xlane.xlu1 %663  ;;  %v1399_v42 = vpop.eup %1398  ;;  %1416 = vrsqrt.f32 %v1994_v30 }
 0x2b7   :  { %1418 = vrsqrt.f32 %v2061_v61 }
 0x2b8   :  { %v1401_v27 = vpop.eup %1400  ;;  %1420 = vrsqrt.f32 %v2005_v17 }
 0x2b9   :  { %1422 = vrsqrt.f32 %v2086_v45 }
 0x2ba   :  { %v956_v6 = vpop.xlane.xlu1 %955  ;;  %1424 = vrsqrt.f32 %v2076_v39 }
 0x2bb   :  { %v1020_v57 = vmul.f32 %v1385_v54, %v956_v6  ;;  %v1058_v54 = vsub.f32 1.0, %v1034_v12  ;;  %v1073_v6 = vmul.f32 0.0, %v1057_v4  ;;  %1426 = vlog2.f32 %v2088_v21 }
 0x2bc   :  { %v914_v21 = vand.u32 2147483648, %v1988_v52  ;;  %1428 = vrsqrt.f32 %v2015_v36 }
 0x2bd   :  { %v1051_v47 = vsub.f32 1.0, %v1020_v57  ;;  %v1091_v57 = vsel %vm187_vm11, %v1071_v59, 0.0  ;;  %v1095_v28 = vsel %vm187_vm11, %v1073_v6, 0.0  ;;  %v747_v59 = vand.u32 2147483648, %v2025_v43 }
 0x2be   :  { %v958_v23 = vpop.xlane.xlu1 %957  ;;  %v754_v6 = vand.u32 2147483648, %v2044_v34  ;;  %1430 = vrsqrt.f32 %v2090_v53 }
 0x2bf   :  { %v1067_v56 = vmul.f32 0.0, %v1051_v47  ;;  %v1022_v11 = vmul.f32 %v1391_v22, %v958_v23  ;;  %v1074_v22 = vmul.f32 0.0, %v1058_v54 }
 0x2c1   :  { %v1083_v44 = vsel %vm187_vm11, %v1067_v56, 0.0  ;;  %v1052_v31 = vsub.f32 1.0, %v1022_v11  ;;  %v1403_v56 = vpop.eup %1402  ;;  %v1097_v11 = vsel %vm187_vm11, %v1074_v22, 0.0 }
 0x2c2   :  { %v1084_v24 = vadd.f32 %v1083_v44, %v1082_v41  ;;  %v962_v25 = vpop.xlane.xlu1 %961  ;;  %v1405_v51 = vpop.eup %1404 }
 0x2c3   :  { %v1068_v16 = vmul.f32 0.0, %v1052_v31  ;;  %v1026_v40 = vmul.f32 %v1397_v50, %v962_v25  ;;  %v1407_v35 = vpop.eup %1406  ;;  %v896_v50 = vmul.f32 %v1403_v56, %v1982_v18  ;;  %v736_v2 = vmul.f32 %v1405_v51, %v2017_v38 }
 0x2c5   :  { %v1085_v32 = vsel %vm187_vm11, %v1068_v16, 0.0  ;;  %v1054_v37 = vsub.f32 1.0, %v1026_v40  ;;  %v740_v16 = vand.u32 2147483648, %v2017_v38  ;;  %v898_v40 = vsel %vm897_vm12, %v1982_v18, %v896_v50 }
 0x2c6   :  { %v1086_v8 = vadd.f32 %v1085_v32, %v1084_v24  ;;  %v966_v19 = vpop.xlane.xlu1 %965  ;;  %v1409_v24 = vpop.eup %1408  ;;  %v738_v12 = vsel %vm737_vm13, %v2017_v38, %v736_v2  ;;  %v901_v38 = vsel %vm899_vm14, %v900_v3, %v898_v40  ;;  %vm927_vm13 = vcmp.eq.f32.partialorder %v1994_v30, 0.0 }
 0x2c7   :  { %v1070_v20 = vmul.f32 0.0, %v1054_v37  ;;  %v1030_v48 = vmul.f32 %v1399_v42, %v966_v19  ;;  %v1411_v32 = vpop.eup %1410  ;;  %v903_v37 = vmul.f32 %v1407_v35, %v1986_v46  ;;  %v743_v4 = vmul.f32 %v1409_v24, %v2025_v43 }
 0x2c8   :  { %v1088_v60 = vadd.f32 %v1087_v62, %v1086_v8  ;;  %v1413_v42 = vpop.eup %1412  ;;  %v907_v62 = vand.u32 2147483648, %v1986_v46  ;;  %v741_v8 = vsel %vm739_vm15, %v740_v16, %v738_v12  ;;  %v910_v19 = vmul.f32 %v1411_v32, %v1988_v52 }
 0x2c9   :  { %v1089_v58 = vsel %vm187_vm11, %v1070_v20, 0.0  ;;  %v1056_v63 = vsub.f32 1.0, %v1030_v48  ;;  %v905_v20 = vsel %vm904_vm0, %v1986_v46, %v903_v37  ;;  %v745_v48 = vsel %vm744_vm1, %v2025_v43, %v743_v4 }
 0x2ca   :  { %v1090_v9 = vadd.f32 %v1089_v58, %v1088_v60  ;;  %v972_v15 = vpop.xlane.xlu1 %971  ;;  %v750_v54 = vmul.f32 %v1413_v42, %v2044_v34  ;;  %v995_v18 = vmul.f32 %v901_v38, %v741_v8  ;;  %v2146_v60 = vshrl.u32 %v45_v55, 7 }
 0x2cb   :  { %v1072_v14 = vmul.f32 0.0, %v1056_v63  ;;  %v1036_v26 = vmul.f32 %v1401_v27, %v972_v15  ;;  %v1415_v27 = vpop.eup %1414  ;;  %v912_v43 = vsel %vm911_vm3, %v1988_v52, %v910_v19  ;;  %v908_v55 = vsel %vm906_vm2, %v907_v62, %v905_v20 }
 0x2cc   :  { %v1092_v47 = vadd.f32 %v1091_v57, %v1090_v9  ;;  %v1417_v58 = vpop.eup %1416  ;;  %v748_v9 = vsel %vm746_vm4, %v747_v59, %v745_v48  ;;  %v917_v57 = vmul.f32 %v1415_v27, %v1990_v49  ;;  %v1011_v46 = vmax.f32 %v995_v18, 1e-07 }
 0x2cd   :  { %v1093_v5 = vsel %vm187_vm11, %v1072_v14, 0.0  ;;  %v1059_v23 = vsub.f32 1.0, %v1036_v26  ;;  %v1419_v63 = vpop.eup %1418  ;;  %v752_v14 = vsel %vm751_vm5, %v2044_v34, %v750_v54  ;;  %v921_v26 = vand.u32 2147483648, %v1990_v49  ;;  %v2173_v34 = vpop.xlane.xlu0 %973 }
 0x2ce   :  { %v1094_v7 = vadd.f32 %v1093_v5, %v1092_v47  ;;  %v1421_v15 = vpop.eup %1420  ;;  %vm50_vm12 = vcmp.lt.s32.totalorder %v2146_v60, 2  ;;  %v928_v47 = vand.u32 2147483648, %v1994_v30  ;;  %v757_v5 = vmul.f32 %v1419_v63, %v2061_v61 }
 0x2cf   :  { %v1075_v29 = vmul.f32 0.0, %v1059_v23  ;;  %v1423_v22 = vpop.eup %1422  ;;  %vm476_vm14 = vcmp.eq.f32.partialorder %v2005_v17, inf  ;;  %vm758_vm15 = vcmp.eq.f32.partialorder %v2061_v61, inf  ;;  %v915_v56 = vsel %vm913_vm6, %v914_v21, %v912_v43 }
 0x2d0   :  { %v1096_v41 = vadd.f32 %v1095_v28, %v1094_v7  ;;  %v996_v28 = vmul.f32 %v908_v55, %v748_v9  ;;  %v1425_v23 = vpop.eup %1424  ;;  %v755_v7 = vsel %vm753_vm9, %v754_v6, %v752_v14  ;;  %v475_v51 = vmul.f32 %v1421_v15, %v2005_v17  ;;  %v976_v15 = vpop.xlane.xlu1 %975 }
 0x2d1   :  { %v1099_v44 = vsel %vm187_vm11, %v1075_v29, 0.0  ;;  %v924_v29 = vmul.f32 %v1417_v58, %v1994_v30  ;;  %vm760_vm0 = vcmp.eq.f32.partialorder %v2061_v61, 0.0  ;;  %vm466_vm1 = vcmp.eq.f32.partialorder %v2086_v45, inf  ;;  %v978_v4 = vpop.xlane.xlu0 %977 }
 0x2d2   :  { %v1098_v31 = vadd.f32 %v1097_v11, %v1096_v41  ;;  %v919_v11 = vsel %vm918_vm7, %v1990_v49, %v917_v57  ;;  %v465_v41 = vmul.f32 %v1423_v22, %v2086_v45  ;;  %1432 = vrcp.f32 %v1011_v46 }
 0x2d3   :  { %v759_v52 = vsel %vm758_vm15, %v2061_v61, %v757_v5  ;;  %v764_v35 = vmul.f32 %v1425_v23, %v2076_v39  ;;  %v1012_v50 = vmax.f32 %v996_v28, 1e-07  ;;  %v997_v2 = vmul.f32 %v915_v56, %v755_v7 }
 0x2d4   :  { %v2116_v25 = vadd.f32 %v1099_v44, %v1098_v31  ;;  %v1427_v44 = vpop.eup %1426  ;;  %v761_v31 = vand.u32 2147483648, %v2061_v61  ;;  %vm478_vm2 = vcmp.eq.f32.partialorder %v2005_v17, 0.0  ;;  %v479_v24 = vand.u32 2147483648, %v2005_v17 }
 0x2d5   :  { %vm765_vm3 = vcmp.eq.f32.partialorder %v2076_v39, inf  ;;  %v469_v3 = vand.u32 2147483648, %v2086_v45  ;;  %v477_v16 = vsel %vm476_vm14, %v2005_v17, %v475_v51  ;;  %v180_v40 = vmul.f32 0.6931472, %v1427_v44  ;;  %v1429_v8 = vpop.eup %1428 }
 0x2d6   :  { %v467_v12 = vsel %vm466_vm1, %v2086_v45, %v465_v41  ;;  %vm468_vm4 = vcmp.eq.f32.partialorder %v2086_v45, 0.0  ;;  %v926_v32 = vsel %vm925_vm10, %v1994_v30, %v924_v29  ;;  %v768_v37 = vand.u32 2147483648, %v2076_v39  ;;  %v1431_v19 = vpop.eup %1430 }
 0x2d7   :  { %v762_v42 = vsel %vm760_vm0, %v761_v31, %v759_v52  ;;  %v922_v62 = vsel %vm920_vm8, %v921_v26, %v919_v11  ;;  %v766_v38 = vsel %vm765_vm3, %v2076_v39, %v764_v35  ;;  %vm767_vm5 = vcmp.eq.f32.partialorder %v2076_v39, 0.0 }
 0x2d8   :  { %1434 = vrcp.f32 %v1012_v50  ;;  %v1013_v45 = vmax.f32 %v997_v2, 1e-07  ;;  %v470_v59 = vsel %vm468_vm4, %v469_v3, %v467_v12  ;;  %v480_v20 = vsel %vm478_vm2, %v479_v24, %v477_v16 }
 0x2d9   :  { %v181_v48 = vadd.f32 %v180_v40, %v1775_v10  ;;  %v2213_v61 = vsel %vm50_vm12, 1.0, %v1465_v1  ;;  %v998_v49 = vmul.f32 %v922_v62, %v762_v42  ;;  %v931_v54 = vmul.f32 %v1429_v8, %v2015_v36 }
 0x2da   :  { %vm932_vm6 = vcmp.eq.f32.partialorder %v2015_v36, inf  ;;  %v769_v27 = vsel %vm767_vm5, %v768_v37, %v766_v38  ;;  %v929_v18 = vsel %vm927_vm13, %v928_v47, %v926_v32  ;;  %v771_v17 = vmul.f32 %v1431_v19, %v2090_v53 }
 0x2db   :  { %1436 = vrcp.f32 %v1013_v45  ;;  %v484_v10 = vmul.f32 %v480_v20, %v470_v59  ;;  %vm772_vm7 = vcmp.eq.f32.partialorder %v2090_v53, inf  ;;  %v999_v1 = vmul.f32 %v929_v18, %v769_v27 }
 0x2dc   :  { %v1433_v21 = vpop.eup %1432  ;;  %v1014_v43 = vmax.f32 %v998_v49, 1e-07  ;;  %v933_v6 = vsel %vm932_vm6, %v2015_v36, %v931_v54  ;;  %vm934_vm8 = vcmp.eq.f32.partialorder %v2015_v36, 0.0  ;;  %v935_v9 = vand.u32 2147483648, %v2015_v36 }
 0x2dd   :  { %v775_v30 = vand.u32 2147483648, %v2090_v53  ;;  %v773_v55 = vsel %vm772_vm7, %v2090_v53, %v771_v17  ;;  %vm774_vm9 = vcmp.eq.f32.partialorder %v2090_v53, 0.0  ;;  %v485_v14 = vmax.f32 %v484_v10, 1e-07 }
 0x2de   :  { %v1038_v22 = vmul.f32 %v1433_v21, %v2173_v34  ;;  %v1015_v46 = vmax.f32 %v999_v1, 1e-07  ;;  %1438 = vrcp.f32 %v1014_v43  ;;  %v936_v5 = vsel %vm934_vm8, %v935_v9, %v933_v6 }
 0x2df   :  { %v776_v47 = vsel %vm774_vm9, %v775_v30, %v773_v55  ;;  %1440 = vrcp.f32 %v485_v14  ;;  %vm1128_vm10 = vcmp.eq.s32.totalorder %v1713_v33, 0 }
 0x2e0   :  { %v1060_v28 = vsub.f32 1.0, %v1038_v22  ;;  %v1000_v53 = vmul.f32 %v936_v5, %v776_v47 }
 0x2e2   :  { %v1435_v26 = vpop.eup %1434  ;;  %v1076_v29 = vmul.f32 0.0, %v1060_v28  ;;  %v1016_v34 = vmax.f32 %v1000_v53, 1e-07 }
 0x2e3   :  { %v1040_v23 = vmul.f32 %v1435_v26, %v976_v15 }
 0x2e4   :  { %v1101_v52 = vsel %vm187_vm11, %v1076_v29, 0.0 }
 0x2e5   :  { %v1437_v7 = vpop.eup %1436  ;;  %v1061_v51 = vsub.f32 1.0, %v1040_v23  ;;  %v1102_v32 = vadd.f32 %v1101_v52, %v2116_v25 }
 0x2e6   :  { %v1042_v41 = vmul.f32 %v1437_v7, %v978_v4 }
 0x2e7   :  { %v1077_v35 = vmul.f32 0.0, %v1061_v51 }
 0x2e8   :  { %v1439_v44 = vpop.eup %1438  ;;  %v1062_v50 = vsub.f32 1.0, %v1042_v41 }
 0x2e9   :  { %v1441_v3 = vpop.eup %1440  ;;  %v1103_v62 = vsel %vm187_vm11, %v1077_v35, 0.0 }
 0x2ea   :  { %v1078_v8 = vmul.f32 0.0, %v1062_v50  ;;  %v1104_v20 = vadd.f32 %v1103_v62, %v1102_v32 }
 0x2ec   :  { %v1105_v27 = vsel %vm187_vm11, %v1078_v8, 0.0 }
 0x2ed   :  { %v184_v39 = vpop.xlane.xlu0 %183  ;;  %v1106_v21 = vadd.f32 %v1105_v27, %v1104_v20 }
 0x2ee   :  { %v185_v58 = vsub.f32 %v181_v48, %v184_v39 }
 0x2f0   :  { %v186_v63 = vmul.f32 %v2213_v61, %v185_v58 }
 0x2f1   :  { %v982_v56 = vpop.xlane.xlu0 %981 }
 0x2f2   :  { %v188_v57 = vsel %vm187_vm11, %v186_v63, 0.0 }
 0x2f3   :  { %189 = vadd.xlane.f32.xlu0 %v188_v57 }
 0x2f5   :  { %v483_v2 = vpop.xlane.xlu0 %482 }
 0x2f6   :  { %v367_v36 = vpop.xlane.xlu1 %366  ;;  %v487_v37 = vmul.f32 %v1441_v3, %v483_v2 }
 0x2f7   :  { %1442 = vlog2.f32 %v367_v36 }
 0x2f8   :  { %1444 = vrcp.f32 %v1015_v46  ;;  %v488_v48 = vsub.f32 1.0, %v487_v37 }
 0x2fa   :  { %v437_v11 = vpop.xlane.xlu1 %436  ;;  %v489_v43 = vmul.f32 %v2213_v61, %v488_v48 }
 0x2fb   :  { %1446 = vlog2.f32 %v437_v11 }
 0x2fc   :  { %1448 = vrcp.f32 %v1016_v34  ;;  %v490_v57 = vsel %vm187_vm11, %v489_v43, 0.0 }
 0x2fe   :  { %v980_v31 = vpop.xlane.xlu1 %979 }
 0x2ff   :  { %v1044_v24 = vmul.f32 %v1439_v44, %v980_v31 }
 0x301   :  { %v1443_v16 = vpop.eup %1442  ;;  %v1063_v40 = vsub.f32 1.0, %v1044_v24 }
 0x302   :  { %v1445_v12 = vpop.eup %1444  ;;  %v369_v42 = vmul.f32 0.6931472, %v1443_v16  ;;  %v373_v4 = vpop.xlane.xlu1 %372 }
 0x303   :  { %v1046_v38 = vmul.f32 %v1445_v12, %v982_v56  ;;  %v1079_v59 = vmul.f32 0.0, %v1063_v40 }
 0x304   :  { %v370_v45 = vadd.f32 %v369_v42, %v1948_v0 }
 0x305   :  { %v1447_v19 = vpop.eup %1446  ;;  %v1064_v18 = vsub.f32 1.0, %v1046_v38  ;;  %v1107_v58 = vsel %vm187_vm11, %v1079_v59, 0.0 }
 0x306   :  { %v439_v49 = vmul.f32 0.6931472, %v1447_v19  ;;  %v374_v54 = vsub.f32 %v370_v45, %v373_v4  ;;  %v443_v39 = vpop.xlane.xlu1 %442  ;;  %v1449_v10 = vpop.eup %1448  ;;  %v1108_v30 = vadd.f32 %v1107_v58, %v1106_v21 }
 0x307   :  { %v1080_v6 = vmul.f32 0.0, %v1064_v18 }
 0x308   :  { %v440_v25 = vadd.f32 %v439_v49, %v1950_v13  ;;  %v375_v17 = vmul.f32 %v2213_v61, %v374_v54 }
 0x309   :  { %v1109_v14 = vsel %vm187_vm11, %v1080_v6, 0.0 }
 0x30a   :  { %v444_v1 = vsub.f32 %v440_v25, %v443_v39  ;;  %v984_v0 = vpop.xlane.xlu1 %983  ;;  %v376_v63 = vsel %vm187_vm11, %v375_v17, 0.0  ;;  %v1110_v26 = vadd.f32 %v1109_v14, %v1108_v30 }
 0x30b   :  { %v1048_v9 = vmul.f32 %v1449_v10, %v984_v0  ;;  %377 = vadd.xlane.f32.xlu1 %v376_v63 }
 0x30c   :  { %v445_v55 = vmul.f32 %v2213_v61, %v444_v1 }
 0x30d   :  { %v1065_v15 = vsub.f32 1.0, %v1048_v9 }
 0x30e   :  { %v446_v13 = vsel %vm187_vm11, %v445_v55, 0.0 }
 0x30f   :  { %v1081_v22 = vmul.f32 0.0, %v1065_v15  ;;  %447 = vadd.xlane.f32.xlu0 %v446_v13  ;;  %491 = vadd.xlane.f32.xlu1 %v490_v57 }
 0x311   :  { %v1111_v46 = vsel %vm187_vm11, %v1081_v22, 0.0  ;;  %vm1127_vm11 = vcmp.eq.s32.totalorder %v2146_v60, 0 }
 0x312   :  { %v1112_v47 = vadd.f32 %v1111_v46, %v1110_v26  ;;  %vm1129_vm12 = vmand %vm1127_vm11, %vm1128_vm10 }
 0x314   :  { %1113 = vadd.xlane.f32.xlu0 %v1112_v47 }
 0x380   :  { %v190_v5 = vpop.xlane.xlu0 %189 }
 0x381   :  { %v191_v36 = vrot.slane %v190_v5, 4 }
 0x383   :  { %v192_v28 = vadd.f32 %v191_v36, %v190_v5 }
 0x385   :  { %v193_v23 = vrot.slane %v192_v28, 2 }
 0x387   :  { %v194_v61 = vadd.f32 %v193_v23, %v192_v28 }
 0x389   :  { %v195_v7 = vrot.slane %v194_v61, 1 }
 0x38b   :  { %v196_v53 = vadd.f32 %v195_v7, %v194_v61 }
 0x38d   :  { %1279 = vpush %v196_v53 }
 0x398   :  { %v378_v56 = vpop.xlane.xlu1 %377 }
 0x399   :  { %v379_v11 = vrot.slane %v378_v56, 4 }
 0x39b   :  { %v380_v29 = vadd.f32 %v379_v11, %v378_v56 }
 0x39c   :  { %v492_v51 = vpop.xlane.xlu1 %491  ;;  %v448_v41 = vpop.xlane.xlu0 %447 }
 0x39d   :  { %v381_v34 = vrot.slane %v380_v29, 2  ;;  %v493_v44 = vrot.slane %v492_v51, 4  ;;  %v449_v31 = vrot.slane %v448_v41, 4 }
 0x39f   :  { %v494_v52 = vadd.f32 %v493_v44, %v492_v51  ;;  %v450_v35 = vadd.f32 %v449_v31, %v448_v41  ;;  %v382_v50 = vadd.f32 %v381_v34, %v380_v29 }
 0x3a1   :  { %v495_v2 = vrot.slane %v494_v52, 2  ;;  %v451_v24 = vrot.slane %v450_v35, 2  ;;  %v1114_v3 = vpop.xlane.xlu0 %1113  ;;  %v383_v16 = vrot.slane %v382_v50, 1 }
 0x3a2   :  { %v1115_v40 = vrot.slane %v1114_v3, 4 }
 0x3a3   :  { %v496_v12 = vadd.f32 %v495_v2, %v494_v52  ;;  %v384_v32 = vadd.f32 %v383_v16, %v382_v50  ;;  %v452_v37 = vadd.f32 %v451_v24, %v450_v35 }
 0x3a4   :  { %v1116_v42 = vadd.f32 %v1115_v40, %v1114_v3 }
 0x3a5   :  { %1281 = vpush %v384_v32  ;;  %v453_v4 = vrot.slane %v452_v37, 1  ;;  %v497_v62 = vrot.slane %v496_v12, 1 }
 0x3a6   :  { %v1117_v8 = vrot.slane %v1116_v42, 2 }
 0x3a7   :  { %v454_v38 = vadd.f32 %v453_v4, %v452_v37  ;;  %v498_v45 = vadd.f32 %v497_v62, %v496_v12 }
 0x3a8   :  { %v1118_v19 = vadd.f32 %v1117_v8, %v1116_v42 }
 0x3a9   :  { %1283 = vpush %v454_v38 }
 0x3aa   :  { %1285 = vpush %v498_v45  ;;  %v1119_v59 = vrot.slane %v1118_v19, 1 }
 0x3ac   :  { %v1120_v20 = vadd.f32 %v1119_v59, %v1118_v19 }
 0x3ae   :  { %1287 = vpush %v1120_v20 }
 0x3be   :  { %s1280_s2 = spop %1279 }
 0x3bf   :  { %s198_s14 = smul.f32 0.5, %s1280_s2 }
 0x3d6   :  { %s1282_s6 = spop %1281 }
 0x3d7   :  { %s386_s12 = smul.f32 0.5, %s1282_s6 }
 0x3d9   :  { %s387_s5 = smul.f32 0.5, %s386_s12 }
 0x3da   :  { %s1284_s15 = spop %1283 }
 0x3db   :  { %s456_s1 = smul.f32 0.5, %s1284_s15  ;;  %s1286_s16 = spop %1285 }
 0x3dc   :  { %s388_s17 = sadd.f32 %s387_s5, %s198_s14  ;;  %s500_s7 = smul.f32 %s1286_s16, %s1143_s0 }
 0x3dd   :  { %s457_s18 = smul.f32 0.5, %s456_s1 }
 0x3de   :  { %s501_s21 = smul.f32 0.5, %s500_s7 }
 0x3df   :  { %s458_s19 = sadd.f32 %s457_s18, %s388_s17  ;;  %s1288_s20 = spop %1287 }
 0x3e0   :  { %s1122_s22 = smul.f32 %s1288_s20, %s1142_s13 }
 0x3e1   :  { %s502_s23 = sadd.f32 %s501_s21, %s458_s19 }
 0x3e2   :  { %s1125_s24 = smul.f32 0.125, %s1122_s22 }
 0x3e4   :  { %s1126_s25 = sadd.f32 %s1125_s24, %s502_s23 }
 0x3e6   :  { %v1130_v48 = vstv %s1126_s25 }
 0x3e7   :  { %v1131_v49 = vsel %vm1129_vm12, %v1130_v48, 0.0 }
 0x3e8   :  { %1132 = vst [vmem:[%s2258_s8] sm:$0xff] %v1131_v49 }
 0x3e9   :  { %1141 = vsyncpa [#allocation3], 1 }

</bundles_post_ra>
